<compile_context>
chip_gen: v6e
topology: v6e:2x2x1
jax: 0.10.0
libtpu: 0.0.40
codegen_flags: <defaults>
</compile_context>

<pallas_src>
import jax
import jax.numpy as jnp
from jax.experimental import pallas as pl
from jax.experimental.pallas import tpu as pltpu


def _round_up(x, m):
    return ((x + m - 1) // m) * m


def _make_lstm_kernel(seq_len, time_block, hp, mm_dtype):
    """Recurrent LSTM kernel over one time block of `time_block` steps.

    Refs:
      gx_ref  : (Tc, Bp, 4*Hp) f32   precomputed x-projection + bias
      whh_ref : (Hp, 4*Hp)     mm_dtype  recurrent weight W_hh^T (resident)
      out_ref : (Tc, Bp, Hp)   f32   hidden outputs for this time block
      cn_ref  : (Bp, Hp)       f32   final cell state (written on last block)
      h_sc, c_sc : (Bp, Hp)    f32   recurrent state (persist across grid)
    """

    def kernel(gx_ref, whh_ref, out_ref, cn_ref, h_sc, c_sc):
        blk = pl.program_id(0)

        @pl.when(blk == 0)
        def _():
            h_sc[...] = jnp.zeros_like(h_sc)
            c_sc[...] = jnp.zeros_like(c_sc)

        whh = whh_ref[...]  # hoist the resident weight load out of the loop

        def step(i, carry):
            t = blk * time_block + i
            h_prev = h_sc[...]
            c_prev = c_sc[...]

            # Only the recurrent projection runs per step; input projection was
            # hoisted.  bf16 operands, f32 MXU accumulation.
            gates = gx_ref[i] + jnp.dot(
                h_prev.astype(mm_dtype), whh,
                preferred_element_type=jnp.float32)

            # PyTorch gate order: i, f, g, o.  Slices are 128-lane aligned
            # because Hp is a multiple of 128.
            i_g = jax.nn.sigmoid(gates[:, 0 * hp:1 * hp])
            f_g = jax.nn.sigmoid(gates[:, 1 * hp:2 * hp])
            g_g = jnp.tanh(gates[:, 2 * hp:3 * hp])
            o_g = jax.nn.sigmoid(gates[:, 3 * hp:4 * hp])

            c_new = f_g * c_prev + i_g * g_g
            h_new = o_g * jnp.tanh(c_new)

            # Guard padded time steps (t >= seq_len) so that the carried state
            # (and therefore h_n / c_n) is exactly the state after step T-1.
            valid = t < seq_len
            h_sc[...] = jnp.where(valid, h_new, h_prev)
            c_sc[...] = jnp.where(valid, c_new, c_prev)
            out_ref[i] = h_new
            return carry

        jax.lax.fori_loop(0, time_block, step, 0, unroll=True)

        @pl.when(blk == pl.num_programs(0) - 1)
        def _():
            cn_ref[...] = c_sc[...]

    return kernel


def lstm_encoder(x, w_ih, w_hh, b_ih, b_hh, *, time_block=32,
                 recurrent_matmul_dtype=jnp.bfloat16):
    """x: (B, T, D) float32; weights in PyTorch layout:
       w_ih (4H, D), w_hh (4H, H), b_ih (4H,), b_hh (4H,).
       Returns (outputs (B,T,H), (h_n (1,B,H), c_n (1,B,H)))."""
    B, T, D = x.shape
    H4, _ = w_ih.shape
    H = H4 // 4
    f32 = jnp.float32

    # Lane/sublane-dense padded sizes.
    Hp = _round_up(H, 128)            # lane-dense gates / outputs
    Bp = _round_up(max(B, 8), 8)      # fill vreg sublanes / MXU rows
    Tc = max(1, min(time_block, T))   # time block per grid step
    nblk = pl.cdiv(T, Tc)
    Tp = nblk * Tc

    # Pad each gate block (i, f, g, o) separately so gate k occupies lanes
    # [k*Hp, (k+1)*Hp).  Zero padding is exact for the LSTM recurrence.
    def pad_gate_rows(w):  # (4H, X) -> (4Hp, X)
        X = w.shape[1]
        w4 = w.reshape(4, H, X)
        return jnp.pad(w4, ((0, 0), (0, Hp - H), (0, 0))).reshape(4 * Hp, X)

    wih_p = pad_gate_rows(w_ih.astype(f32))                      # (4Hp, D)
    whh_p = pad_gate_rows(w_hh.astype(f32))                      # (4Hp, H)
    whh_p = jnp.pad(whh_p, ((0, 0), (0, Hp - H)))                # (4Hp, Hp)
    bias_p = jnp.pad((b_ih + b_hh).astype(f32).reshape(4, H),
                     ((0, 0), (0, Hp - H))).reshape(4 * Hp)      # (4Hp,)

    # Recurrent weight: bf16 on v6e/v7x (native MXU dtype, half the VMEM/DMA).
    whh_t = jnp.transpose(whh_p).astype(recurrent_matmul_dtype)  # (Hp, 4Hp)

    # Hoisted input projection: ONE big MXU-efficient matmul over all time
    # steps, emitted directly in time-major layout (no separate transpose pass).
    x_p = jnp.pad(x.astype(f32), ((0, Bp - B), (0, 0), (0, 0)))  # (Bp, T, D)
    gates_x = jnp.einsum('btd,dg->tbg', x_p, jnp.transpose(wih_p),
                         preferred_element_type=f32) + bias_p[None, None, :]
    gates_x = jnp.pad(gates_x, ((0, Tp - T), (0, 0), (0, 0)))    # (Tp, Bp, 4Hp)

    kernel = _make_lstm_kernel(T, Tc, Hp, recurrent_matmul_dtype)

    out_tm, c_last = pl.pallas_call(
        kernel,
        out_shape=(
            jax.ShapeDtypeStruct((Tp, Bp, Hp), f32),   # hidden outputs, time-major
            jax.ShapeDtypeStruct((Bp, Hp), f32),       # c_n
        ),
        grid_spec=pltpu.PrefetchScalarGridSpec(
            num_scalar_prefetch=0,
            grid=(nblk,),
            in_specs=[
                # Time-blocked gates_x stream.
                pl.BlockSpec((Tc, Bp, 4 * Hp), lambda b: (b, 0, 0)),
                # Resident recurrent weight W_hh^T (constant block index, so it
                # is DMA'd once).  TODO(synk): for very large H on v7x (64 MiB
                # VMEM), single-buffer it via pipeline_mode=pl.Buffered(1) or a
                # one-shot DMA into scratch.
                pl.BlockSpec((Hp, 4 * Hp), lambda b: (0, 0)),
            ],
            out_specs=[
                pl.BlockSpec((Tc, Bp, Hp), lambda b: (b, 0, 0)),
                pl.BlockSpec((Bp, Hp), lambda b: (0, 0)),
            ],
            scratch_shapes=[
                pltpu.VMEM((Bp, Hp), f32),   # h state (persists across grid)
                pltpu.VMEM((Bp, Hp), f32),   # c state (persists across grid)
            ],
        ),
        compiler_params=pltpu.CompilerParams(
            dimension_semantics=("arbitrary",),     # time recurrence is sequential
            vmem_limit_bytes=64 * 1024 * 1024,      # v5e default 16 MiB is tight
        ),
    )(gates_x, whh_t)

    # Strip padding, back to batch_first; h_n is just the last output step.
    outputs = jnp.transpose(out_tm[:T, :B, :H], (1, 0, 2))       # (B, T, H)
    h_n = outputs[:, -1, :][None]                                # (1, B, H)
    c_n = c_last[:B, :H][None]                                   # (1, B, H)
    return outputs, (h_n, c_n)


def _lstm_reference(x, w_ih, w_hh, b_ih, b_hh):
    """Pure-JAX reference matching torch.nn.LSTM (num_layers=1, batch_first)."""
    B, T, D = x.shape
    H = w_hh.shape[1]
    b = b_ih + b_hh

    def step(carry, x_t):
        h, c = carry
        gates = x_t @ w_ih.T + h @ w_hh.T + b
        i = jax.nn.sigmoid(gates[:, 0 * H:1 * H])
        f = jax.nn.sigmoid(gates[:, 1 * H:2 * H])
        g = jnp.tanh(gates[:, 2 * H:3 * H])
        o = jax.nn.sigmoid(gates[:, 3 * H:4 * H])
        c_new = f * c + i * g
        h_new = o * jnp.tanh(c_new)
        return (h_new, c_new), h_new

    init = (jnp.zeros((B, H), jnp.float32), jnp.zeros((B, H), jnp.float32))
    (h_n, c_n), outs = jax.lax.scan(step, init, jnp.transpose(x, (1, 0, 2)))
    return jnp.transpose(outs, (1, 0, 2)), (h_n[None], c_n[None])


if __name__ == "__main__":
    B, T, D, H = 2, 8, 16, 32     # batch, seq, input_size, hidden_size

    key = jax.random.PRNGKey(0)
    k1, k2, k3, k4, k5 = jax.random.split(key, 5)
    scale = 1.0 / jnp.sqrt(H)     # PyTorch default LSTM init range
    w_ih = jax.random.uniform(k1, (4 * H, D), jnp.float32, -scale, scale)
    w_hh = jax.random.uniform(k2, (4 * H, H), jnp.float32, -scale, scale)
    b_ih = jax.random.uniform(k3, (4 * H,), jnp.float32, -scale, scale)
    b_hh = jax.random.uniform(k4, (4 * H,), jnp.float32, -scale, scale)
    x = jax.random.normal(k5, (B, T, D), jnp.float32)

    out_ref, (h_ref, c_ref) = _lstm_reference(x, w_ih, w_hh, b_ih, b_hh)

    # Structural correctness check with f32 recurrent matmul (tight tolerance).
    out32, (h32, c32) = lstm_encoder(x, w_ih, w_hh, b_ih, b_hh,
                                     recurrent_matmul_dtype=jnp.float32)
    jax.block_until_ready((out32, h32, c32))
    assert out32.shape == (B, T, H) and h32.shape == (1, B, H) and c32.shape == (1, B, H)
    assert jnp.allclose(out32, out_ref, atol=1e-4)
    assert jnp.allclose(h32, h_ref, atol=1e-4)
    assert jnp.allclose(c32, c_ref, atol=1e-4)

    # Default bf16 recurrent matmul (MXU-native on v6e/v7x): looser tolerance.
    out, (h_n, c_n) = lstm_encoder(x, w_ih, w_hh, b_ih, b_hh)
    jax.block_until_ready((out, h_n, c_n))
    assert out.shape == (B, T, H) and h_n.shape == (1, B, H) and c_n.shape == (1, B, H)
    assert jnp.allclose(out, out_ref, atol=2e-2)
    assert jnp.allclose(h_n, h_ref, atol=2e-2)
    assert jnp.allclose(c_n, c_ref, atol=2e-2)

    print("KERNEL_OK")
</pallas_src>

<mosaic_0001>
module attributes {stable_mosaic.version = 11 : i64} {
  func.func @kernel(%arg0: i32, %arg1: memref<8x8x512xf32, #tpu.memory_space<vmem>>, %arg2: memref<128x512xf32, #tpu.memory_space<vmem>>, %arg3: memref<8x8x128xf32, #tpu.memory_space<vmem>>, %arg4: memref<8x128xf32, #tpu.memory_space<vmem>>, %arg5: memref<8x128xf32, #tpu.memory_space<vmem>>, %arg6: memref<8x128xf32, #tpu.memory_space<vmem>>) attributes {dimension_semantics = [#tpu.dimension_semantics<arbitrary>], iteration_bounds = array<i64: 1>, scalar_prefetch = 0 : i64, scratch_operands = 2 : i64, tpu.core_type = #tpu.core_type<tc>, window_params = [{transform_indices = @transform_0, window_bounds = array<i64: 8, 8, 512>}, {pipeline_mode = #tpu.pipeline_mode<synchronous>, transform_indices = @transform_1, window_bounds = array<i64: 128, 512>}, {transform_indices = @transform_2, window_bounds = array<i64: 8, 8, 128>}, {pipeline_mode = #tpu.pipeline_mode<synchronous>, transform_indices = @transform_3, window_bounds = array<i64: 8, 128>}]} {
    %c0_i32 = arith.constant 0 : i32
    %0 = arith.cmpi eq, %arg0, %c0_i32 : i32
    %1 = arith.extui %0 : i1 to i32
    %c0_i32_0 = arith.constant 0 : i32
    %2 = arith.cmpi ne, %1, %c0_i32_0 : i32
    scf.if %2 {
      %cst_148 = arith.constant 0.000000e+00 : f32
      %351 = vector.broadcast %cst_148 : f32 to vector<8x128xf32>
      %c0_149 = arith.constant 0 : index
      %c0_150 = arith.constant 0 : index
      %352 = vector.load %arg5[%c0_149, %c0_150] : memref<8x128xf32, #tpu.memory_space<vmem>>, vector<8x128xf32>
      tpu.vector_store %arg5[%c0_149, %c0_150], %351 {strides = array<i32>} : memref<8x128xf32, #tpu.memory_space<vmem>>, vector<8x128xf32>,
      %cst_151 = arith.constant 0.000000e+00 : f32
      %353 = vector.broadcast %cst_151 : f32 to vector<8x128xf32>
      %c0_152 = arith.constant 0 : index
      %c0_153 = arith.constant 0 : index
      %354 = vector.load %arg6[%c0_152, %c0_153] : memref<8x128xf32, #tpu.memory_space<vmem>>, vector<8x128xf32>
      tpu.vector_store %arg6[%c0_152, %c0_153], %353 {strides = array<i32>} : memref<8x128xf32, #tpu.memory_space<vmem>>, vector<8x128xf32>,
    } else {
    }
    %c0 = arith.constant 0 : index
    %c0_1 = arith.constant 0 : index
    %3 = vector.load %arg2[%c0, %c0_1] : memref<128x512xf32, #tpu.memory_space<vmem>>, vector<128x512xf32>
    %c0_i32_2 = arith.constant 0 : i32
    %c8_i32 = arith.constant 8 : i32
    %4 = arith.muli %arg0, %c8_i32 : i32
    %5 = arith.addi %4, %c0_i32_2 : i32
    %c0_3 = arith.constant 0 : index
    %c0_4 = arith.constant 0 : index
    %6 = vector.load %arg5[%c0_3, %c0_4] : memref<8x128xf32, #tpu.memory_space<vmem>>, vector<8x128xf32>
    %c0_5 = arith.constant 0 : index
    %c0_6 = arith.constant 0 : index
    %7 = vector.load %arg6[%c0_5, %c0_6] : memref<8x128xf32, #tpu.memory_space<vmem>>, vector<8x128xf32>
    %8 = arith.index_cast %c0_i32_2 : i32 to index
    %c0_7 = arith.constant 0 : index
    %c0_8 = arith.constant 0 : index
    %9 = vector.load %arg1[%8, %c0_7, %c0_8] : memref<8x8x512xf32, #tpu.memory_space<vmem>>, vector<1x8x512xf32>
    %10 = vector.shape_cast %9 : vector<1x8x512xf32> to vector<8x512xf32>
    %cst = arith.constant dense<0.000000e+00> : vector<8x512xf32>
    %11 = tpu.matmul %6, %3, %cst {dimension_numbers = #tpu.dot_dimension_numbers<[1], [0], [0], [1], [0, 0, 1, 1], [], []>} : vector<8x128xf32>, vector<128x512xf32>, vector<8x512xf32> -> vector<8x512xf32>
    %12 = arith.addf %10, %11 : vector<8x512xf32>
    %13 = vector.extract_strided_slice %12 {offsets = [0, 0], sizes = [8, 128], strides = [1, 1]} : vector<8x512xf32> to vector<8x128xf32>
    %14 = arith.negf %13 : vector<8x128xf32>
    %15 = math.exp %14 : vector<8x128xf32>
    %cst_9 = arith.constant 1.000000e+00 : f32
    %16 = vector.broadcast %cst_9 : f32 to vector<8x128xf32>
    %17 = arith.addf %16, %15 : vector<8x128xf32>
    %18 = arith.divf %16, %17 : vector<8x128xf32>
    %19 = vector.extract_strided_slice %12 {offsets = [0, 128], sizes = [8, 128], strides = [1, 1]} : vector<8x512xf32> to vector<8x128xf32>
    %20 = arith.negf %19 : vector<8x128xf32>
    %21 = math.exp %20 : vector<8x128xf32>
    %cst_10 = arith.constant 1.000000e+00 : f32
    %22 = vector.broadcast %cst_10 : f32 to vector<8x128xf32>
    %23 = arith.addf %22, %21 : vector<8x128xf32>
    %24 = arith.divf %22, %23 : vector<8x128xf32>
    %25 = vector.extract_strided_slice %12 {offsets = [0, 256], sizes = [8, 128], strides = [1, 1]} : vector<8x512xf32> to vector<8x128xf32>
    %26 = math.tanh %25 : vector<8x128xf32>
    %27 = vector.extract_strided_slice %12 {offsets = [0, 384], sizes = [8, 128], strides = [1, 1]} : vector<8x512xf32> to vector<8x128xf32>
    %28 = arith.negf %27 : vector<8x128xf32>
    %29 = math.exp %28 : vector<8x128xf32>
    %cst_11 = arith.constant 1.000000e+00 : f32
    %30 = vector.broadcast %cst_11 : f32 to vector<8x128xf32>
    %31 = arith.addf %30, %29 : vector<8x128xf32>
    %32 = arith.divf %30, %31 : vector<8x128xf32>
    %33 = arith.mulf %24, %7 : vector<8x128xf32>
    %34 = arith.mulf %18, %26 : vector<8x128xf32>
    %35 = arith.addf %33, %34 : vector<8x128xf32>
    %36 = math.tanh %35 : vector<8x128xf32>
    %37 = arith.mulf %32, %36 : vector<8x128xf32>
    %c8_i32_12 = arith.constant 8 : i32
    %38 = arith.cmpi slt, %5, %c8_i32_12 : i32
    %39 = arith.select %38, %37, %6 : vector<8x128xf32>
    %c0_13 = arith.constant 0 : index
    %c0_14 = arith.constant 0 : index
    %40 = vector.load %arg5[%c0_13, %c0_14] : memref<8x128xf32, #tpu.memory_space<vmem>>, vector<8x128xf32>
    tpu.vector_store %arg5[%c0_13, %c0_14], %39 {strides = array<i32>} : memref<8x128xf32, #tpu.memory_space<vmem>>, vector<8x128xf32>,
    %41 = arith.select %38, %35, %7 : vector<8x128xf32>
    %c0_15 = arith.constant 0 : index
    %c0_16 = arith.constant 0 : index
    %42 = vector.load %arg6[%c0_15, %c0_16] : memref<8x128xf32, #tpu.memory_space<vmem>>, vector<8x128xf32>
    tpu.vector_store %arg6[%c0_15, %c0_16], %41 {strides = array<i32>} : memref<8x128xf32, #tpu.memory_space<vmem>>, vector<8x128xf32>,
    %43 = arith.index_cast %c0_i32_2 : i32 to index
    %c0_17 = arith.constant 0 : index
    %c0_18 = arith.constant 0 : index
    %44 = vector.load %arg3[%43, %c0_17, %c0_18] : memref<8x8x128xf32, #tpu.memory_space<vmem>>, vector<1x8x128xf32>
    %45 = vector.shape_cast %44 : vector<1x8x128xf32> to vector<8x128xf32>
    %46 = vector.shape_cast %37 : vector<8x128xf32> to vector<1x8x128xf32>
    tpu.vector_store %arg3[%43, %c0_17, %c0_18], %46 {strides = array<i32>} : memref<8x8x128xf32, #tpu.memory_space<vmem>>, vector<1x8x128xf32>,
    %c1_i32 = arith.constant 1 : i32
    %c8_i32_19 = arith.constant 8 : i32
    %47 = arith.muli %arg0, %c8_i32_19 : i32
    %48 = arith.addi %47, %c1_i32 : i32
    %c0_20 = arith.constant 0 : index
    %c0_21 = arith.constant 0 : index
    %49 = vector.load %arg5[%c0_20, %c0_21] : memref<8x128xf32, #tpu.memory_space<vmem>>, vector<8x128xf32>
    %c0_22 = arith.constant 0 : index
    %c0_23 = arith.constant 0 : index
    %50 = vector.load %arg6[%c0_22, %c0_23] : memref<8x128xf32, #tpu.memory_space<vmem>>, vector<8x128xf32>
    %51 = arith.index_cast %c1_i32 : i32 to index
    %c0_24 = arith.constant 0 : index
    %c0_25 = arith.constant 0 : index
    %52 = vector.load %arg1[%51, %c0_24, %c0_25] : memref<8x8x512xf32, #tpu.memory_space<vmem>>, vector<1x8x512xf32>
    %53 = vector.shape_cast %52 : vector<1x8x512xf32> to vector<8x512xf32>
    %cst_26 = arith.constant dense<0.000000e+00> : vector<8x512xf32>
    %54 = tpu.matmul %49, %3, %cst_26 {dimension_numbers = #tpu.dot_dimension_numbers<[1], [0], [0], [1], [0, 0, 1, 1], [], []>} : vector<8x128xf32>, vector<128x512xf32>, vector<8x512xf32> -> vector<8x512xf32>
    %55 = arith.addf %53, %54 : vector<8x512xf32>
    %56 = vector.extract_strided_slice %55 {offsets = [0, 0], sizes = [8, 128], strides = [1, 1]} : vector<8x512xf32> to vector<8x128xf32>
    %57 = arith.negf %56 : vector<8x128xf32>
    %58 = math.exp %57 : vector<8x128xf32>
    %cst_27 = arith.constant 1.000000e+00 : f32
    %59 = vector.broadcast %cst_27 : f32 to vector<8x128xf32>
    %60 = arith.addf %59, %58 : vector<8x128xf32>
    %61 = arith.divf %59, %60 : vector<8x128xf32>
    %62 = vector.extract_strided_slice %55 {offsets = [0, 128], sizes = [8, 128], strides = [1, 1]} : vector<8x512xf32> to vector<8x128xf32>
    %63 = arith.negf %62 : vector<8x128xf32>
    %64 = math.exp %63 : vector<8x128xf32>
    %cst_28 = arith.constant 1.000000e+00 : f32
    %65 = vector.broadcast %cst_28 : f32 to vector<8x128xf32>
    %66 = arith.addf %65, %64 : vector<8x128xf32>
    %67 = arith.divf %65, %66 : vector<8x128xf32>
    %68 = vector.extract_strided_slice %55 {offsets = [0, 256], sizes = [8, 128], strides = [1, 1]} : vector<8x512xf32> to vector<8x128xf32>
    %69 = math.tanh %68 : vector<8x128xf32>
    %70 = vector.extract_strided_slice %55 {offsets = [0, 384], sizes = [8, 128], strides = [1, 1]} : vector<8x512xf32> to vector<8x128xf32>
    %71 = arith.negf %70 : vector<8x128xf32>
    %72 = math.exp %71 : vector<8x128xf32>
    %cst_29 = arith.constant 1.000000e+00 : f32
    %73 = vector.broadcast %cst_29 : f32 to vector<8x128xf32>
    %74 = arith.addf %73, %72 : vector<8x128xf32>
    %75 = arith.divf %73, %74 : vector<8x128xf32>
    %76 = arith.mulf %67, %50 : vector<8x128xf32>
    %77 = arith.mulf %61, %69 : vector<8x128xf32>
    %78 = arith.addf %76, %77 : vector<8x128xf32>
    %79 = math.tanh %78 : vector<8x128xf32>
    %80 = arith.mulf %75, %79 : vector<8x128xf32>
    %c8_i32_30 = arith.constant 8 : i32
    %81 = arith.cmpi slt, %48, %c8_i32_30 : i32
    %82 = arith.select %81, %80, %49 : vector<8x128xf32>
    %c0_31 = arith.constant 0 : index
    %c0_32 = arith.constant 0 : index
    %83 = vector.load %arg5[%c0_31, %c0_32] : memref<8x128xf32, #tpu.memory_space<vmem>>, vector<8x128xf32>
    tpu.vector_store %arg5[%c0_31, %c0_32], %82 {strides = array<i32>} : memref<8x128xf32, #tpu.memory_space<vmem>>, vector<8x128xf32>,
    %84 = arith.select %81, %78, %50 : vector<8x128xf32>
    %c0_33 = arith.constant 0 : index
    %c0_34 = arith.constant 0 : index
    %85 = vector.load %arg6[%c0_33, %c0_34] : memref<8x128xf32, #tpu.memory_space<vmem>>, vector<8x128xf32>
    tpu.vector_store %arg6[%c0_33, %c0_34], %84 {strides = array<i32>} : memref<8x128xf32, #tpu.memory_space<vmem>>, vector<8x128xf32>,
    %86 = arith.index_cast %c1_i32 : i32 to index
    %c0_35 = arith.constant 0 : index
    %c0_36 = arith.constant 0 : index
    %87 = vector.load %arg3[%86, %c0_35, %c0_36] : memref<8x8x128xf32, #tpu.memory_space<vmem>>, vector<1x8x128xf32>
    %88 = vector.shape_cast %87 : vector<1x8x128xf32> to vector<8x128xf32>
    %89 = vector.shape_cast %80 : vector<8x128xf32> to vector<1x8x128xf32>
    tpu.vector_store %arg3[%86, %c0_35, %c0_36], %89 {strides = array<i32>} : memref<8x8x128xf32, #tpu.memory_space<vmem>>, vector<1x8x128xf32>,
    %c2_i32 = arith.constant 2 : i32
    %c8_i32_37 = arith.constant 8 : i32
    %90 = arith.muli %arg0, %c8_i32_37 : i32
    %91 = arith.addi %90, %c2_i32 : i32
    %c0_38 = arith.constant 0 : index
    %c0_39 = arith.constant 0 : index
    %92 = vector.load %arg5[%c0_38, %c0_39] : memref<8x128xf32, #tpu.memory_space<vmem>>, vector<8x128xf32>
    %c0_40 = arith.constant 0 : index
    %c0_41 = arith.constant 0 : index
    %93 = vector.load %arg6[%c0_40, %c0_41] : memref<8x128xf32, #tpu.memory_space<vmem>>, vector<8x128xf32>
    %94 = arith.index_cast %c2_i32 : i32 to index
    %c0_42 = arith.constant 0 : index
    %c0_43 = arith.constant 0 : index
    %95 = vector.load %arg1[%94, %c0_42, %c0_43] : memref<8x8x512xf32, #tpu.memory_space<vmem>>, vector<1x8x512xf32>
    %96 = vector.shape_cast %95 : vector<1x8x512xf32> to vector<8x512xf32>
    %cst_44 = arith.constant dense<0.000000e+00> : vector<8x512xf32>
    %97 = tpu.matmul %92, %3, %cst_44 {dimension_numbers = #tpu.dot_dimension_numbers<[1], [0], [0], [1], [0, 0, 1, 1], [], []>} : vector<8x128xf32>, vector<128x512xf32>, vector<8x512xf32> -> vector<8x512xf32>
    %98 = arith.addf %96, %97 : vector<8x512xf32>
    %99 = vector.extract_strided_slice %98 {offsets = [0, 0], sizes = [8, 128], strides = [1, 1]} : vector<8x512xf32> to vector<8x128xf32>
    %100 = arith.negf %99 : vector<8x128xf32>
    %101 = math.exp %100 : vector<8x128xf32>
    %cst_45 = arith.constant 1.000000e+00 : f32
    %102 = vector.broadcast %cst_45 : f32 to vector<8x128xf32>
    %103 = arith.addf %102, %101 : vector<8x128xf32>
    %104 = arith.divf %102, %103 : vector<8x128xf32>
    %105 = vector.extract_strided_slice %98 {offsets = [0, 128], sizes = [8, 128], strides = [1, 1]} : vector<8x512xf32> to vector<8x128xf32>
    %106 = arith.negf %105 : vector<8x128xf32>
    %107 = math.exp %106 : vector<8x128xf32>
    %cst_46 = arith.constant 1.000000e+00 : f32
    %108 = vector.broadcast %cst_46 : f32 to vector<8x128xf32>
    %109 = arith.addf %108, %107 : vector<8x128xf32>
    %110 = arith.divf %108, %109 : vector<8x128xf32>
    %111 = vector.extract_strided_slice %98 {offsets = [0, 256], sizes = [8, 128], strides = [1, 1]} : vector<8x512xf32> to vector<8x128xf32>
    %112 = math.tanh %111 : vector<8x128xf32>
    %113 = vector.extract_strided_slice %98 {offsets = [0, 384], sizes = [8, 128], strides = [1, 1]} : vector<8x512xf32> to vector<8x128xf32>
    %114 = arith.negf %113 : vector<8x128xf32>
    %115 = math.exp %114 : vector<8x128xf32>
    %cst_47 = arith.constant 1.000000e+00 : f32
    %116 = vector.broadcast %cst_47 : f32 to vector<8x128xf32>
    %117 = arith.addf %116, %115 : vector<8x128xf32>
    %118 = arith.divf %116, %117 : vector<8x128xf32>
    %119 = arith.mulf %110, %93 : vector<8x128xf32>
    %120 = arith.mulf %104, %112 : vector<8x128xf32>
    %121 = arith.addf %119, %120 : vector<8x128xf32>
    %122 = math.tanh %121 : vector<8x128xf32>
    %123 = arith.mulf %118, %122 : vector<8x128xf32>
    %c8_i32_48 = arith.constant 8 : i32
    %124 = arith.cmpi slt, %91, %c8_i32_48 : i32
    %125 = arith.select %124, %123, %92 : vector<8x128xf32>
    %c0_49 = arith.constant 0 : index
    %c0_50 = arith.constant 0 : index
    %126 = vector.load %arg5[%c0_49, %c0_50] : memref<8x128xf32, #tpu.memory_space<vmem>>, vector<8x128xf32>
    tpu.vector_store %arg5[%c0_49, %c0_50], %125 {strides = array<i32>} : memref<8x128xf32, #tpu.memory_space<vmem>>, vector<8x128xf32>,
    %127 = arith.select %124, %121, %93 : vector<8x128xf32>
    %c0_51 = arith.constant 0 : index
    %c0_52 = arith.constant 0 : index
    %128 = vector.load %arg6[%c0_51, %c0_52] : memref<8x128xf32, #tpu.memory_space<vmem>>, vector<8x128xf32>
    tpu.vector_store %arg6[%c0_51, %c0_52], %127 {strides = array<i32>} : memref<8x128xf32, #tpu.memory_space<vmem>>, vector<8x128xf32>,
    %129 = arith.index_cast %c2_i32 : i32 to index
    %c0_53 = arith.constant 0 : index
    %c0_54 = arith.constant 0 : index
    %130 = vector.load %arg3[%129, %c0_53, %c0_54] : memref<8x8x128xf32, #tpu.memory_space<vmem>>, vector<1x8x128xf32>
    %131 = vector.shape_cast %130 : vector<1x8x128xf32> to vector<8x128xf32>
    %132 = vector.shape_cast %123 : vector<8x128xf32> to vector<1x8x128xf32>
    tpu.vector_store %arg3[%129, %c0_53, %c0_54], %132 {strides = array<i32>} : memref<8x8x128xf32, #tpu.memory_space<vmem>>, vector<1x8x128xf32>,
    %c3_i32 = arith.constant 3 : i32
    %c8_i32_55 = arith.constant 8 : i32
    %133 = arith.muli %arg0, %c8_i32_55 : i32
    %134 = arith.addi %133, %c3_i32 : i32
    %c0_56 = arith.constant 0 : index
    %c0_57 = arith.constant 0 : index
    %135 = vector.load %arg5[%c0_56, %c0_57] : memref<8x128xf32, #tpu.memory_space<vmem>>, vector<8x128xf32>
    %c0_58 = arith.constant 0 : index
    %c0_59 = arith.constant 0 : index
    %136 = vector.load %arg6[%c0_58, %c0_59] : memref<8x128xf32, #tpu.memory_space<vmem>>, vector<8x128xf32>
    %137 = arith.index_cast %c3_i32 : i32 to index
    %c0_60 = arith.constant 0 : index
    %c0_61 = arith.constant 0 : index
    %138 = vector.load %arg1[%137, %c0_60, %c0_61] : memref<8x8x512xf32, #tpu.memory_space<vmem>>, vector<1x8x512xf32>
    %139 = vector.shape_cast %138 : vector<1x8x512xf32> to vector<8x512xf32>
    %cst_62 = arith.constant dense<0.000000e+00> : vector<8x512xf32>
    %140 = tpu.matmul %135, %3, %cst_62 {dimension_numbers = #tpu.dot_dimension_numbers<[1], [0], [0], [1], [0, 0, 1, 1], [], []>} : vector<8x128xf32>, vector<128x512xf32>, vector<8x512xf32> -> vector<8x512xf32>
    %141 = arith.addf %139, %140 : vector<8x512xf32>
    %142 = vector.extract_strided_slice %141 {offsets = [0, 0], sizes = [8, 128], strides = [1, 1]} : vector<8x512xf32> to vector<8x128xf32>
    %143 = arith.negf %142 : vector<8x128xf32>
    %144 = math.exp %143 : vector<8x128xf32>
    %cst_63 = arith.constant 1.000000e+00 : f32
    %145 = vector.broadcast %cst_63 : f32 to vector<8x128xf32>
    %146 = arith.addf %145, %144 : vector<8x128xf32>
    %147 = arith.divf %145, %146 : vector<8x128xf32>
    %148 = vector.extract_strided_slice %141 {offsets = [0, 128], sizes = [8, 128], strides = [1, 1]} : vector<8x512xf32> to vector<8x128xf32>
    %149 = arith.negf %148 : vector<8x128xf32>
    %150 = math.exp %149 : vector<8x128xf32>
    %cst_64 = arith.constant 1.000000e+00 : f32
    %151 = vector.broadcast %cst_64 : f32 to vector<8x128xf32>
    %152 = arith.addf %151, %150 : vector<8x128xf32>
    %153 = arith.divf %151, %152 : vector<8x128xf32>
    %154 = vector.extract_strided_slice %141 {offsets = [0, 256], sizes = [8, 128], strides = [1, 1]} : vector<8x512xf32> to vector<8x128xf32>
    %155 = math.tanh %154 : vector<8x128xf32>
    %156 = vector.extract_strided_slice %141 {offsets = [0, 384], sizes = [8, 128], strides = [1, 1]} : vector<8x512xf32> to vector<8x128xf32>
    %157 = arith.negf %156 : vector<8x128xf32>
    %158 = math.exp %157 : vector<8x128xf32>
    %cst_65 = arith.constant 1.000000e+00 : f32
    %159 = vector.broadcast %cst_65 : f32 to vector<8x128xf32>
    %160 = arith.addf %159, %158 : vector<8x128xf32>
    %161 = arith.divf %159, %160 : vector<8x128xf32>
    %162 = arith.mulf %153, %136 : vector<8x128xf32>
    %163 = arith.mulf %147, %155 : vector<8x128xf32>
    %164 = arith.addf %162, %163 : vector<8x128xf32>
    %165 = math.tanh %164 : vector<8x128xf32>
    %166 = arith.mulf %161, %165 : vector<8x128xf32>
    %c8_i32_66 = arith.constant 8 : i32
    %167 = arith.cmpi slt, %134, %c8_i32_66 : i32
    %168 = arith.select %167, %166, %135 : vector<8x128xf32>
    %c0_67 = arith.constant 0 : index
    %c0_68 = arith.constant 0 : index
    %169 = vector.load %arg5[%c0_67, %c0_68] : memref<8x128xf32, #tpu.memory_space<vmem>>, vector<8x128xf32>
    tpu.vector_store %arg5[%c0_67, %c0_68], %168 {strides = array<i32>} : memref<8x128xf32, #tpu.memory_space<vmem>>, vector<8x128xf32>,
    %170 = arith.select %167, %164, %136 : vector<8x128xf32>
    %c0_69 = arith.constant 0 : index
    %c0_70 = arith.constant 0 : index
    %171 = vector.load %arg6[%c0_69, %c0_70] : memref<8x128xf32, #tpu.memory_space<vmem>>, vector<8x128xf32>
    tpu.vector_store %arg6[%c0_69, %c0_70], %170 {strides = array<i32>} : memref<8x128xf32, #tpu.memory_space<vmem>>, vector<8x128xf32>,
    %172 = arith.index_cast %c3_i32 : i32 to index
    %c0_71 = arith.constant 0 : index
    %c0_72 = arith.constant 0 : index
    %173 = vector.load %arg3[%172, %c0_71, %c0_72] : memref<8x8x128xf32, #tpu.memory_space<vmem>>, vector<1x8x128xf32>
    %174 = vector.shape_cast %173 : vector<1x8x128xf32> to vector<8x128xf32>
    %175 = vector.shape_cast %166 : vector<8x128xf32> to vector<1x8x128xf32>
    tpu.vector_store %arg3[%172, %c0_71, %c0_72], %175 {strides = array<i32>} : memref<8x8x128xf32, #tpu.memory_space<vmem>>, vector<1x8x128xf32>,
    %c4_i32 = arith.constant 4 : i32
    %c8_i32_73 = arith.constant 8 : i32
    %176 = arith.muli %arg0, %c8_i32_73 : i32
    %177 = arith.addi %176, %c4_i32 : i32
    %c0_74 = arith.constant 0 : index
    %c0_75 = arith.constant 0 : index
    %178 = vector.load %arg5[%c0_74, %c0_75] : memref<8x128xf32, #tpu.memory_space<vmem>>, vector<8x128xf32>
    %c0_76 = arith.constant 0 : index
    %c0_77 = arith.constant 0 : index
    %179 = vector.load %arg6[%c0_76, %c0_77] : memref<8x128xf32, #tpu.memory_space<vmem>>, vector<8x128xf32>
    %180 = arith.index_cast %c4_i32 : i32 to index
    %c0_78 = arith.constant 0 : index
    %c0_79 = arith.constant 0 : index
    %181 = vector.load %arg1[%180, %c0_78, %c0_79] : memref<8x8x512xf32, #tpu.memory_space<vmem>>, vector<1x8x512xf32>
    %182 = vector.shape_cast %181 : vector<1x8x512xf32> to vector<8x512xf32>
    %cst_80 = arith.constant dense<0.000000e+00> : vector<8x512xf32>
    %183 = tpu.matmul %178, %3, %cst_80 {dimension_numbers = #tpu.dot_dimension_numbers<[1], [0], [0], [1], [0, 0, 1, 1], [], []>} : vector<8x128xf32>, vector<128x512xf32>, vector<8x512xf32> -> vector<8x512xf32>
    %184 = arith.addf %182, %183 : vector<8x512xf32>
    %185 = vector.extract_strided_slice %184 {offsets = [0, 0], sizes = [8, 128], strides = [1, 1]} : vector<8x512xf32> to vector<8x128xf32>
    %186 = arith.negf %185 : vector<8x128xf32>
    %187 = math.exp %186 : vector<8x128xf32>
    %cst_81 = arith.constant 1.000000e+00 : f32
    %188 = vector.broadcast %cst_81 : f32 to vector<8x128xf32>
    %189 = arith.addf %188, %187 : vector<8x128xf32>
    %190 = arith.divf %188, %189 : vector<8x128xf32>
    %191 = vector.extract_strided_slice %184 {offsets = [0, 128], sizes = [8, 128], strides = [1, 1]} : vector<8x512xf32> to vector<8x128xf32>
    %192 = arith.negf %191 : vector<8x128xf32>
    %193 = math.exp %192 : vector<8x128xf32>
    %cst_82 = arith.constant 1.000000e+00 : f32
    %194 = vector.broadcast %cst_82 : f32 to vector<8x128xf32>
    %195 = arith.addf %194, %193 : vector<8x128xf32>
    %196 = arith.divf %194, %195 : vector<8x128xf32>
    %197 = vector.extract_strided_slice %184 {offsets = [0, 256], sizes = [8, 128], strides = [1, 1]} : vector<8x512xf32> to vector<8x128xf32>
    %198 = math.tanh %197 : vector<8x128xf32>
    %199 = vector.extract_strided_slice %184 {offsets = [0, 384], sizes = [8, 128], strides = [1, 1]} : vector<8x512xf32> to vector<8x128xf32>
    %200 = arith.negf %199 : vector<8x128xf32>
    %201 = math.exp %200 : vector<8x128xf32>
    %cst_83 = arith.constant 1.000000e+00 : f32
    %202 = vector.broadcast %cst_83 : f32 to vector<8x128xf32>
    %203 = arith.addf %202, %201 : vector<8x128xf32>
    %204 = arith.divf %202, %203 : vector<8x128xf32>
    %205 = arith.mulf %196, %179 : vector<8x128xf32>
    %206 = arith.mulf %190, %198 : vector<8x128xf32>
    %207 = arith.addf %205, %206 : vector<8x128xf32>
    %208 = math.tanh %207 : vector<8x128xf32>
    %209 = arith.mulf %204, %208 : vector<8x128xf32>
    %c8_i32_84 = arith.constant 8 : i32
    %210 = arith.cmpi slt, %177, %c8_i32_84 : i32
    %211 = arith.select %210, %209, %178 : vector<8x128xf32>
    %c0_85 = arith.constant 0 : index
    %c0_86 = arith.constant 0 : index
    %212 = vector.load %arg5[%c0_85, %c0_86] : memref<8x128xf32, #tpu.memory_space<vmem>>, vector<8x128xf32>
    tpu.vector_store %arg5[%c0_85, %c0_86], %211 {strides = array<i32>} : memref<8x128xf32, #tpu.memory_space<vmem>>, vector<8x128xf32>,
    %213 = arith.select %210, %207, %179 : vector<8x128xf32>
    %c0_87 = arith.constant 0 : index
    %c0_88 = arith.constant 0 : index
    %214 = vector.load %arg6[%c0_87, %c0_88] : memref<8x128xf32, #tpu.memory_space<vmem>>, vector<8x128xf32>
    tpu.vector_store %arg6[%c0_87, %c0_88], %213 {strides = array<i32>} : memref<8x128xf32, #tpu.memory_space<vmem>>, vector<8x128xf32>,
    %215 = arith.index_cast %c4_i32 : i32 to index
    %c0_89 = arith.constant 0 : index
    %c0_90 = arith.constant 0 : index
    %216 = vector.load %arg3[%215, %c0_89, %c0_90] : memref<8x8x128xf32, #tpu.memory_space<vmem>>, vector<1x8x128xf32>
    %217 = vector.shape_cast %216 : vector<1x8x128xf32> to vector<8x128xf32>
    %218 = vector.shape_cast %209 : vector<8x128xf32> to vector<1x8x128xf32>
    tpu.vector_store %arg3[%215, %c0_89, %c0_90], %218 {strides = array<i32>} : memref<8x8x128xf32, #tpu.memory_space<vmem>>, vector<1x8x128xf32>,
    %c5_i32 = arith.constant 5 : i32
    %c8_i32_91 = arith.constant 8 : i32
    %219 = arith.muli %arg0, %c8_i32_91 : i32
    %220 = arith.addi %219, %c5_i32 : i32
    %c0_92 = arith.constant 0 : index
    %c0_93 = arith.constant 0 : index
    %221 = vector.load %arg5[%c0_92, %c0_93] : memref<8x128xf32, #tpu.memory_space<vmem>>, vector<8x128xf32>
    %c0_94 = arith.constant 0 : index
    %c0_95 = arith.constant 0 : index
    %222 = vector.load %arg6[%c0_94, %c0_95] : memref<8x128xf32, #tpu.memory_space<vmem>>, vector<8x128xf32>
    %223 = arith.index_cast %c5_i32 : i32 to index
    %c0_96 = arith.constant 0 : index
    %c0_97 = arith.constant 0 : index
    %224 = vector.load %arg1[%223, %c0_96, %c0_97] : memref<8x8x512xf32, #tpu.memory_space<vmem>>, vector<1x8x512xf32>
    %225 = vector.shape_cast %224 : vector<1x8x512xf32> to vector<8x512xf32>
    %cst_98 = arith.constant dense<0.000000e+00> : vector<8x512xf32>
    %226 = tpu.matmul %221, %3, %cst_98 {dimension_numbers = #tpu.dot_dimension_numbers<[1], [0], [0], [1], [0, 0, 1, 1], [], []>} : vector<8x128xf32>, vector<128x512xf32>, vector<8x512xf32> -> vector<8x512xf32>
    %227 = arith.addf %225, %226 : vector<8x512xf32>
    %228 = vector.extract_strided_slice %227 {offsets = [0, 0], sizes = [8, 128], strides = [1, 1]} : vector<8x512xf32> to vector<8x128xf32>
    %229 = arith.negf %228 : vector<8x128xf32>
    %230 = math.exp %229 : vector<8x128xf32>
    %cst_99 = arith.constant 1.000000e+00 : f32
    %231 = vector.broadcast %cst_99 : f32 to vector<8x128xf32>
    %232 = arith.addf %231, %230 : vector<8x128xf32>
    %233 = arith.divf %231, %232 : vector<8x128xf32>
    %234 = vector.extract_strided_slice %227 {offsets = [0, 128], sizes = [8, 128], strides = [1, 1]} : vector<8x512xf32> to vector<8x128xf32>
    %235 = arith.negf %234 : vector<8x128xf32>
    %236 = math.exp %235 : vector<8x128xf32>
    %cst_100 = arith.constant 1.000000e+00 : f32
    %237 = vector.broadcast %cst_100 : f32 to vector<8x128xf32>
    %238 = arith.addf %237, %236 : vector<8x128xf32>
    %239 = arith.divf %237, %238 : vector<8x128xf32>
    %240 = vector.extract_strided_slice %227 {offsets = [0, 256], sizes = [8, 128], strides = [1, 1]} : vector<8x512xf32> to vector<8x128xf32>
    %241 = math.tanh %240 : vector<8x128xf32>
    %242 = vector.extract_strided_slice %227 {offsets = [0, 384], sizes = [8, 128], strides = [1, 1]} : vector<8x512xf32> to vector<8x128xf32>
    %243 = arith.negf %242 : vector<8x128xf32>
    %244 = math.exp %243 : vector<8x128xf32>
    %cst_101 = arith.constant 1.000000e+00 : f32
    %245 = vector.broadcast %cst_101 : f32 to vector<8x128xf32>
    %246 = arith.addf %245, %244 : vector<8x128xf32>
    %247 = arith.divf %245, %246 : vector<8x128xf32>
    %248 = arith.mulf %239, %222 : vector<8x128xf32>
    %249 = arith.mulf %233, %241 : vector<8x128xf32>
    %250 = arith.addf %248, %249 : vector<8x128xf32>
    %251 = math.tanh %250 : vector<8x128xf32>
    %252 = arith.mulf %247, %251 : vector<8x128xf32>
    %c8_i32_102 = arith.constant 8 : i32
    %253 = arith.cmpi slt, %220, %c8_i32_102 : i32
    %254 = arith.select %253, %252, %221 : vector<8x128xf32>
    %c0_103 = arith.constant 0 : index
    %c0_104 = arith.constant 0 : index
    %255 = vector.load %arg5[%c0_103, %c0_104] : memref<8x128xf32, #tpu.memory_space<vmem>>, vector<8x128xf32>
    tpu.vector_store %arg5[%c0_103, %c0_104], %254 {strides = array<i32>} : memref<8x128xf32, #tpu.memory_space<vmem>>, vector<8x128xf32>,
    %256 = arith.select %253, %250, %222 : vector<8x128xf32>
    %c0_105 = arith.constant 0 : index
    %c0_106 = arith.constant 0 : index
    %257 = vector.load %arg6[%c0_105, %c0_106] : memref<8x128xf32, #tpu.memory_space<vmem>>, vector<8x128xf32>
    tpu.vector_store %arg6[%c0_105, %c0_106], %256 {strides = array<i32>} : memref<8x128xf32, #tpu.memory_space<vmem>>, vector<8x128xf32>,
    %258 = arith.index_cast %c5_i32 : i32 to index
    %c0_107 = arith.constant 0 : index
    %c0_108 = arith.constant 0 : index
    %259 = vector.load %arg3[%258, %c0_107, %c0_108] : memref<8x8x128xf32, #tpu.memory_space<vmem>>, vector<1x8x128xf32>
    %260 = vector.shape_cast %259 : vector<1x8x128xf32> to vector<8x128xf32>
    %261 = vector.shape_cast %252 : vector<8x128xf32> to vector<1x8x128xf32>
    tpu.vector_store %arg3[%258, %c0_107, %c0_108], %261 {strides = array<i32>} : memref<8x8x128xf32, #tpu.memory_space<vmem>>, vector<1x8x128xf32>,
    %c6_i32 = arith.constant 6 : i32
    %c8_i32_109 = arith.constant 8 : i32
    %262 = arith.muli %arg0, %c8_i32_109 : i32
    %263 = arith.addi %262, %c6_i32 : i32
    %c0_110 = arith.constant 0 : index
    %c0_111 = arith.constant 0 : index
    %264 = vector.load %arg5[%c0_110, %c0_111] : memref<8x128xf32, #tpu.memory_space<vmem>>, vector<8x128xf32>
    %c0_112 = arith.constant 0 : index
    %c0_113 = arith.constant 0 : index
    %265 = vector.load %arg6[%c0_112, %c0_113] : memref<8x128xf32, #tpu.memory_space<vmem>>, vector<8x128xf32>
    %266 = arith.index_cast %c6_i32 : i32 to index
    %c0_114 = arith.constant 0 : index
    %c0_115 = arith.constant 0 : index
    %267 = vector.load %arg1[%266, %c0_114, %c0_115] : memref<8x8x512xf32, #tpu.memory_space<vmem>>, vector<1x8x512xf32>
    %268 = vector.shape_cast %267 : vector<1x8x512xf32> to vector<8x512xf32>
    %cst_116 = arith.constant dense<0.000000e+00> : vector<8x512xf32>
    %269 = tpu.matmul %264, %3, %cst_116 {dimension_numbers = #tpu.dot_dimension_numbers<[1], [0], [0], [1], [0, 0, 1, 1], [], []>} : vector<8x128xf32>, vector<128x512xf32>, vector<8x512xf32> -> vector<8x512xf32>
    %270 = arith.addf %268, %269 : vector<8x512xf32>
    %271 = vector.extract_strided_slice %270 {offsets = [0, 0], sizes = [8, 128], strides = [1, 1]} : vector<8x512xf32> to vector<8x128xf32>
    %272 = arith.negf %271 : vector<8x128xf32>
    %273 = math.exp %272 : vector<8x128xf32>
    %cst_117 = arith.constant 1.000000e+00 : f32
    %274 = vector.broadcast %cst_117 : f32 to vector<8x128xf32>
    %275 = arith.addf %274, %273 : vector<8x128xf32>
    %276 = arith.divf %274, %275 : vector<8x128xf32>
    %277 = vector.extract_strided_slice %270 {offsets = [0, 128], sizes = [8, 128], strides = [1, 1]} : vector<8x512xf32> to vector<8x128xf32>
    %278 = arith.negf %277 : vector<8x128xf32>
    %279 = math.exp %278 : vector<8x128xf32>
    %cst_118 = arith.constant 1.000000e+00 : f32
    %280 = vector.broadcast %cst_118 : f32 to vector<8x128xf32>
    %281 = arith.addf %280, %279 : vector<8x128xf32>
    %282 = arith.divf %280, %281 : vector<8x128xf32>
    %283 = vector.extract_strided_slice %270 {offsets = [0, 256], sizes = [8, 128], strides = [1, 1]} : vector<8x512xf32> to vector<8x128xf32>
    %284 = math.tanh %283 : vector<8x128xf32>
    %285 = vector.extract_strided_slice %270 {offsets = [0, 384], sizes = [8, 128], strides = [1, 1]} : vector<8x512xf32> to vector<8x128xf32>
    %286 = arith.negf %285 : vector<8x128xf32>
    %287 = math.exp %286 : vector<8x128xf32>
    %cst_119 = arith.constant 1.000000e+00 : f32
    %288 = vector.broadcast %cst_119 : f32 to vector<8x128xf32>
    %289 = arith.addf %288, %287 : vector<8x128xf32>
    %290 = arith.divf %288, %289 : vector<8x128xf32>
    %291 = arith.mulf %282, %265 : vector<8x128xf32>
    %292 = arith.mulf %276, %284 : vector<8x128xf32>
    %293 = arith.addf %291, %292 : vector<8x128xf32>
    %294 = math.tanh %293 : vector<8x128xf32>
    %295 = arith.mulf %290, %294 : vector<8x128xf32>
    %c8_i32_120 = arith.constant 8 : i32
    %296 = arith.cmpi slt, %263, %c8_i32_120 : i32
    %297 = arith.select %296, %295, %264 : vector<8x128xf32>
    %c0_121 = arith.constant 0 : index
    %c0_122 = arith.constant 0 : index
    %298 = vector.load %arg5[%c0_121, %c0_122] : memref<8x128xf32, #tpu.memory_space<vmem>>, vector<8x128xf32>
    tpu.vector_store %arg5[%c0_121, %c0_122], %297 {strides = array<i32>} : memref<8x128xf32, #tpu.memory_space<vmem>>, vector<8x128xf32>,
    %299 = arith.select %296, %293, %265 : vector<8x128xf32>
    %c0_123 = arith.constant 0 : index
    %c0_124 = arith.constant 0 : index
    %300 = vector.load %arg6[%c0_123, %c0_124] : memref<8x128xf32, #tpu.memory_space<vmem>>, vector<8x128xf32>
    tpu.vector_store %arg6[%c0_123, %c0_124], %299 {strides = array<i32>} : memref<8x128xf32, #tpu.memory_space<vmem>>, vector<8x128xf32>,
    %301 = arith.index_cast %c6_i32 : i32 to index
    %c0_125 = arith.constant 0 : index
    %c0_126 = arith.constant 0 : index
    %302 = vector.load %arg3[%301, %c0_125, %c0_126] : memref<8x8x128xf32, #tpu.memory_space<vmem>>, vector<1x8x128xf32>
    %303 = vector.shape_cast %302 : vector<1x8x128xf32> to vector<8x128xf32>
    %304 = vector.shape_cast %295 : vector<8x128xf32> to vector<1x8x128xf32>
    tpu.vector_store %arg3[%301, %c0_125, %c0_126], %304 {strides = array<i32>} : memref<8x8x128xf32, #tpu.memory_space<vmem>>, vector<1x8x128xf32>,
    %c7_i32 = arith.constant 7 : i32
    %c8_i32_127 = arith.constant 8 : i32
    %305 = arith.muli %arg0, %c8_i32_127 : i32
    %306 = arith.addi %305, %c7_i32 : i32
    %c0_128 = arith.constant 0 : index
    %c0_129 = arith.constant 0 : index
    %307 = vector.load %arg5[%c0_128, %c0_129] : memref<8x128xf32, #tpu.memory_space<vmem>>, vector<8x128xf32>
    %c0_130 = arith.constant 0 : index
    %c0_131 = arith.constant 0 : index
    %308 = vector.load %arg6[%c0_130, %c0_131] : memref<8x128xf32, #tpu.memory_space<vmem>>, vector<8x128xf32>
    %309 = arith.index_cast %c7_i32 : i32 to index
    %c0_132 = arith.constant 0 : index
    %c0_133 = arith.constant 0 : index
    %310 = vector.load %arg1[%309, %c0_132, %c0_133] : memref<8x8x512xf32, #tpu.memory_space<vmem>>, vector<1x8x512xf32>
    %311 = vector.shape_cast %310 : vector<1x8x512xf32> to vector<8x512xf32>
    %cst_134 = arith.constant dense<0.000000e+00> : vector<8x512xf32>
    %312 = tpu.matmul %307, %3, %cst_134 {dimension_numbers = #tpu.dot_dimension_numbers<[1], [0], [0], [1], [0, 0, 1, 1], [], []>} : vector<8x128xf32>, vector<128x512xf32>, vector<8x512xf32> -> vector<8x512xf32>
    %313 = arith.addf %311, %312 : vector<8x512xf32>
    %314 = vector.extract_strided_slice %313 {offsets = [0, 0], sizes = [8, 128], strides = [1, 1]} : vector<8x512xf32> to vector<8x128xf32>
    %315 = arith.negf %314 : vector<8x128xf32>
    %316 = math.exp %315 : vector<8x128xf32>
    %cst_135 = arith.constant 1.000000e+00 : f32
    %317 = vector.broadcast %cst_135 : f32 to vector<8x128xf32>
    %318 = arith.addf %317, %316 : vector<8x128xf32>
    %319 = arith.divf %317, %318 : vector<8x128xf32>
    %320 = vector.extract_strided_slice %313 {offsets = [0, 128], sizes = [8, 128], strides = [1, 1]} : vector<8x512xf32> to vector<8x128xf32>
    %321 = arith.negf %320 : vector<8x128xf32>
    %322 = math.exp %321 : vector<8x128xf32>
    %cst_136 = arith.constant 1.000000e+00 : f32
    %323 = vector.broadcast %cst_136 : f32 to vector<8x128xf32>
    %324 = arith.addf %323, %322 : vector<8x128xf32>
    %325 = arith.divf %323, %324 : vector<8x128xf32>
    %326 = vector.extract_strided_slice %313 {offsets = [0, 256], sizes = [8, 128], strides = [1, 1]} : vector<8x512xf32> to vector<8x128xf32>
    %327 = math.tanh %326 : vector<8x128xf32>
    %328 = vector.extract_strided_slice %313 {offsets = [0, 384], sizes = [8, 128], strides = [1, 1]} : vector<8x512xf32> to vector<8x128xf32>
    %329 = arith.negf %328 : vector<8x128xf32>
    %330 = math.exp %329 : vector<8x128xf32>
    %cst_137 = arith.constant 1.000000e+00 : f32
    %331 = vector.broadcast %cst_137 : f32 to vector<8x128xf32>
    %332 = arith.addf %331, %330 : vector<8x128xf32>
    %333 = arith.divf %331, %332 : vector<8x128xf32>
    %334 = arith.mulf %325, %308 : vector<8x128xf32>
    %335 = arith.mulf %319, %327 : vector<8x128xf32>
    %336 = arith.addf %334, %335 : vector<8x128xf32>
    %337 = math.tanh %336 : vector<8x128xf32>
    %338 = arith.mulf %333, %337 : vector<8x128xf32>
    %c8_i32_138 = arith.constant 8 : i32
    %339 = arith.cmpi slt, %306, %c8_i32_138 : i32
    %340 = arith.select %339, %338, %307 : vector<8x128xf32>
    %c0_139 = arith.constant 0 : index
    %c0_140 = arith.constant 0 : index
    %341 = vector.load %arg5[%c0_139, %c0_140] : memref<8x128xf32, #tpu.memory_space<vmem>>, vector<8x128xf32>
    tpu.vector_store %arg5[%c0_139, %c0_140], %340 {strides = array<i32>} : memref<8x128xf32, #tpu.memory_space<vmem>>, vector<8x128xf32>,
    %342 = arith.select %339, %336, %308 : vector<8x128xf32>
    %c0_141 = arith.constant 0 : index
    %c0_142 = arith.constant 0 : index
    %343 = vector.load %arg6[%c0_141, %c0_142] : memref<8x128xf32, #tpu.memory_space<vmem>>, vector<8x128xf32>
    tpu.vector_store %arg6[%c0_141, %c0_142], %342 {strides = array<i32>} : memref<8x128xf32, #tpu.memory_space<vmem>>, vector<8x128xf32>,
    %344 = arith.index_cast %c7_i32 : i32 to index
    %c0_143 = arith.constant 0 : index
    %c0_144 = arith.constant 0 : index
    %345 = vector.load %arg3[%344, %c0_143, %c0_144] : memref<8x8x128xf32, #tpu.memory_space<vmem>>, vector<1x8x128xf32>
    %346 = vector.shape_cast %345 : vector<1x8x128xf32> to vector<8x128xf32>
    %347 = vector.shape_cast %338 : vector<8x128xf32> to vector<1x8x128xf32>
    tpu.vector_store %arg3[%344, %c0_143, %c0_144], %347 {strides = array<i32>} : memref<8x8x128xf32, #tpu.memory_space<vmem>>, vector<1x8x128xf32>,
    %c8_i32_145 = arith.constant 8 : i32
    %c0_i32_146 = arith.constant 0 : i32
    %348 = arith.cmpi eq, %arg0, %c0_i32_146 : i32
    %349 = arith.extui %348 : i1 to i32
    %c0_i32_147 = arith.constant 0 : i32
    %350 = arith.cmpi ne, %349, %c0_i32_147 : i32
    scf.if %350 {
      %c0_148 = arith.constant 0 : index
      %c0_149 = arith.constant 0 : index
      %351 = vector.load %arg6[%c0_148, %c0_149] : memref<8x128xf32, #tpu.memory_space<vmem>>, vector<8x128xf32>
      %c0_150 = arith.constant 0 : index
      %c0_151 = arith.constant 0 : index
      %352 = vector.load %arg4[%c0_150, %c0_151] : memref<8x128xf32, #tpu.memory_space<vmem>>, vector<8x128xf32>
      tpu.vector_store %arg4[%c0_150, %c0_151], %351 {strides = array<i32>} : memref<8x128xf32, #tpu.memory_space<vmem>>, vector<8x128xf32>,
    } else {
    }
    return
  }
  func.func @transform_0(%arg0: i32) -> (i32, i32, i32) {
    %c0_i32 = arith.constant 0 : i32
    %c0_i32_0 = arith.constant 0 : i32
    %c0_i32_1 = arith.constant 0 : i32
    return %arg0, %c0_i32, %c0_i32_0 : i32, i32, i32
  }
  func.func @transform_1(%arg0: i32) -> (i32, i32) {
    %c0_i32 = arith.constant 0 : i32
    %c0_i32_0 = arith.constant 0 : i32
    %c0_i32_1 = arith.constant 0 : i32
    return %c0_i32, %c0_i32_0 : i32, i32
  }
  func.func @transform_2(%arg0: i32) -> (i32, i32, i32) {
    %c0_i32 = arith.constant 0 : i32
    %c0_i32_0 = arith.constant 0 : i32
    %c0_i32_1 = arith.constant 0 : i32
    return %arg0, %c0_i32, %c0_i32_0 : i32, i32, i32
  }
  func.func @transform_3(%arg0: i32) -> (i32, i32) {
    %c0_i32 = arith.constant 0 : i32
    %c0_i32_0 = arith.constant 0 : i32
    %c0_i32_1 = arith.constant 0 : i32
    return %c0_i32, %c0_i32_0 : i32, i32
  }
}

</mosaic_0001>

<bundles_post_ra>
// kernel: tpu_custom_call.1
= control target key start
LH: loop header
LB: loop body
LE: loop exit
PB: predicated region body
PF: predicated region fallthrough
CT: control target
= control target key end

     0   :  { %9 = vsyncpa [#allocation5], 0  ;;  %s2816_s0 = inlined_call_operand.hbm [shape: f32[8,8,512], index: 0, kind: input, shape index: {}]   ;;  %s2817_s1 = inlined_call_operand.hbm [shape: f32[128,512], index: 1, kind: input, shape index: {}]   ;;  %s2818_s2 = inlined_call_operand.hbm [shape: f32[8,8,128], index: 2, kind: output, shape index: {0}]   ;;  %s2819_s3 = inlined_call_operand.hbm [shape: f32[8,128], index: 3, kind: output, shape index: {1}]  }
   0x1   :  { %10 = vsyncpa [#allocation8], 0 }
   0x2   :  { %11 = vsyncpa [#allocation6], 0 }
   0x3   :  { %12 = vsyncpa [#allocation11], 0  ;;  %s1965_s12 = smov [#allocation4]  }
   0x4   :  { %s18_s13 = sshll.u32 %s1965_s12, 4  ;;  %s19_s13 = int_to_ptr.vmem [resolvable:$true] %s18_s13 }
   0x5   :  { %s1885_s14 = scalar_lea.vmem %s19_s13, 4096  ;;  %p1890_p1 = scmp.lt.s32.totalorder %s19_s13, %s19_s13 }
   0x6   :  { %p1886_p0 = scmp.ne.s32.totalorder %s19_s13, %s1885_s14  ;;  %p1891_p2 = scmp.lt.s32.totalorder %s1885_s14, %s1885_s14 }
   0x8   :  { %p1892_p3 = por %p1891_p2, %p1890_p1 }
   0xa   :  { %p1893_p4 = pnand %p1892_p3, %p1886_p0 }
   0xc   :  { %1896 = shalt.err (!%p1893_p4)
}
   0xd   :  { %s1966_s15 = smov 512   ;;  %s1967_s16 = smov 32  }
   0xe   :  { %24 = dma.hbm_to_vmem [thread:$0]  %s2816_s0, 4096, %s19_s13, [#allocation5], %s1966_s15, %s1966_s15, %s1967_s16  }
   0xf   :  { %s1968_s19 = smov [#allocation7]  }
  0x10   :  { %s30_s20 = sshll.u32 %s1968_s19, 4  ;;  %s31_s20 = int_to_ptr.vmem [resolvable:$true] %s30_s20 }
  0x11   :  { %s1905_s21 = scalar_lea.vmem %s31_s20, 8192  ;;  %p1910_p6 = scmp.lt.s32.totalorder %s31_s20, %s31_s20 }
  0x12   :  { %p1906_p5 = scmp.ne.s32.totalorder %s31_s20, %s1905_s21  ;;  %p1911_p7 = scmp.lt.s32.totalorder %s1905_s21, %s1905_s21 }
  0x14   :  { %p1912_p8 = por %p1911_p7, %p1910_p6 }
  0x16   :  { %p1913_p9 = pnand %p1912_p8, %p1906_p5 }
  0x18   :  { %1916 = shalt.err (!%p1913_p9)
}
  0x19   :  { %36 = dma.hbm_to_vmem [thread:$0]  %s2817_s1, 8192, %s31_s20, [#allocation8], %s1966_s15, %s1966_s15, %s1967_s16  }
  0x1a   :  { %1957 = dma.done.wait [#allocation5], 4096  }
  0x1b   :  { %1958 = vsyncadd [#allocation5], 4294963200 }
  0x1c   :  { %1959 = dma.done.wait [#allocation8], 8192  }
  0x1d   :  { %1960 = vsyncadd [#allocation8], 4294959104  ;;  %v2822_v0 = vmov 0.0   ;;  %v2002_v1 = vld [vmem:[#allocation7 + $0x1e8] sm:$0xff]  ;;  %v2004_v2 = vld [vmem:[#allocation7 + $0x1e0] sm:$0xff]  ;;  %s1970_s0 = smov [#allocation10]  }
  0x1e   :  { %184 = vmatprep.mubr.f32.mxu0 %v2822_v0  ;;  %255 = vmatprep.mubr.f32.mxu1 %v2822_v0  ;;  %2893 = vst [vmem:[#allocation16_spill] sm:$0xff] %v2002_v1  ;;  %v2006_v3 = vld [vmem:[#allocation7 + $0x1c8] sm:$0xff]  ;;  %v2009_v4 = vld [vmem:[#allocation7 + $0x1c0] sm:$0xff]  ;;  %v2023_v9 = vld [vmem:[#allocation7 + $0x1f8] sm:$0xff]  ;;  %s1638_s1 = sshll.u32 %s1970_s0, 4  ;;  %s1639_s1 = int_to_ptr.vmem [resolvable:$true] %s1638_s1 }
  0x1f   :  { %120 = vmatprep.subr.mxu0 %v2002_v1  ;;  %v2012_v5 = vld [vmem:[#allocation7 + $0x1a8] sm:$0xff]  ;;  %v2015_v6 = vld [vmem:[#allocation7 + $0x1a0] sm:$0xff]  ;;  %2894 = vst [vmem:[#allocation17_spill] sm:$0xff] %v2023_v9  ;;  %191 = vmatprep.subr.mxu1 %v2023_v9  ;;  %v2029_v11 = vld [vmem:[#allocation7 + $0x1f0] sm:$0xff]  ;;  %s1917_s24 = scalar_lea.vmem %s1639_s1, 128  ;;  %p1922_p11 = scmp.lt.s32.totalorder %s1639_s1, %s1639_s1 }
  0x20   :  { %121 = vmatpush1.msra.mxu0 %v2004_v2  ;;  %v2018_v7 = vld [vmem:[#allocation7 + $0x188] sm:$0xff]  ;;  %v2021_v8 = vld [vmem:[#allocation7 + $0x180] sm:$0xff]  ;;  %192 = vmatpush1.msra.mxu1 %v2029_v11  ;;  %v2035_v13 = vld [vmem:[#allocation7 + $0x1d8] sm:$0xff]  ;;  %p1918_p10 = scmp.ne.s32.totalorder %s1639_s1, %s1917_s24  ;;  %p1923_p12 = scmp.lt.s32.totalorder %s1917_s24, %s1917_s24 }
  0x21   :  { %122 = vmatprep.subr.mxu0 %v2006_v3  ;;  %v2026_v10 = vld [vmem:[#allocation7 + $0x168] sm:$0xff]  ;;  %v2032_v12 = vld [vmem:[#allocation7 + $0x160] sm:$0xff]  ;;  %v2037_v14 = vld [vmem:[#allocation7 + $0x1d0] sm:$0xff]  ;;  %193 = vmatprep.subr.mxu1 %v2035_v13 }
  0x22   :  { %123 = vmatpush1.msra.mxu0 %v2009_v4  ;;  %v2040_v15 = vld [vmem:[#allocation7 + $0x148] sm:$0xff]  ;;  %v2043_v16 = vld [vmem:[#allocation7 + $0x1b8] sm:$0xff]  ;;  %v2046_v17 = vld [vmem:[#allocation7 + $0x140] sm:$0xff]  ;;  %194 = vmatpush1.msra.mxu1 %v2037_v14  ;;  %p1924_p13 = por %p1923_p12, %p1922_p11 }
  0x23   :  { %124 = vmatprep.subr.mxu0 %v2012_v5  ;;  %v2049_v18 = vld [vmem:[#allocation7 + $0x1b0] sm:$0xff]  ;;  %v2051_v19 = vld [vmem:[#allocation7 + $0x198] sm:$0xff]  ;;  %v2054_v20 = vld [vmem:[#allocation7 + $0x128] sm:$0xff]  ;;  %195 = vmatprep.subr.mxu1 %v2043_v16 }
  0x24   :  { %125 = vmatpush1.msra.mxu0 %v2015_v6  ;;  %v2057_v21 = vld [vmem:[#allocation7 + $0x190] sm:$0xff]  ;;  %v2060_v22 = vld [vmem:[#allocation7 + $0x120] sm:$0xff]  ;;  %196 = vmatpush1.msra.mxu1 %v2049_v18  ;;  %v2063_v23 = vld [vmem:[#allocation7 + $0x178] sm:$0xff]  ;;  %p1925_p0 = pnand %p1924_p13, %p1918_p10 }
  0x25   :  { %126 = vmatprep.subr.mxu0 %v2018_v7  ;;  %v2066_v24 = vld [vmem:[#allocation7 + $0x108] sm:$0xff]  ;;  %197 = vmatprep.subr.mxu1 %v2051_v19  ;;  %v2069_v25 = vld [vmem:[#allocation7 + $0x170] sm:$0xff]  ;;  %v2072_v26 = vld [vmem:[#allocation7 + $0x100] sm:$0xff] }
  0x26   :  { %127 = vmatpush1.msra.mxu0 %v2021_v8  ;;  %198 = vmatpush1.msra.mxu1 %v2057_v21  ;;  %v2075_v27 = vld [vmem:[#allocation7 + $0x158] sm:$0xff]  ;;  %v2078_v28 = vld [vmem:[#allocation7 + $0xe8] sm:$0xff]  ;;  %v2081_v29 = vld [vmem:[#allocation7 + $0x150] sm:$0xff] }
  0x27   :  { %128 = vmatprep.subr.mxu0 %v2026_v10  ;;  %199 = vmatprep.subr.mxu1 %v2063_v23  ;;  %v2084_v30 = vld [vmem:[#allocation7 + $0xe0] sm:$0xff]  ;;  %v2087_v31 = vld [vmem:[#allocation7 + $0x138] sm:$0xff]  ;;  %v2090_v32 = vld [vmem:[#allocation7 + $0xc8] sm:$0xff] }
  0x28   :  { %129 = vmatpush1.msra.mxu0 %v2032_v12  ;;  %200 = vmatpush1.msra.mxu1 %v2069_v25  ;;  %v2093_v33 = vld [vmem:[#allocation7 + $0x130] sm:$0xff]  ;;  %v2096_v34 = vld [vmem:[#allocation7 + $0xc0] sm:$0xff]  ;;  %v2099_v35 = vld [vmem:[#allocation7 + $0x118] sm:$0xff] }
  0x29   :  { %130 = vmatprep.subr.mxu0 %v2040_v15  ;;  %201 = vmatprep.subr.mxu1 %v2075_v27  ;;  %v2102_v36 = vld [vmem:[#allocation7 + $0xa8] sm:$0xff]  ;;  %v2105_v37 = vld [vmem:[#allocation7 + $0x110] sm:$0xff]  ;;  %v2108_v38 = vld [vmem:[#allocation7 + $0xa0] sm:$0xff] }
  0x2a   :  { %131 = vmatpush1.msra.mxu0 %v2046_v17  ;;  %202 = vmatpush1.msra.mxu1 %v2081_v29  ;;  %v2111_v39 = vld [vmem:[#allocation7 + $0xf8] sm:$0xff]  ;;  %v2114_v40 = vld [vmem:[#allocation7 + $0x88] sm:$0xff]  ;;  %v2117_v41 = vld [vmem:[#allocation7 + $0xf0] sm:$0xff] }
  0x2b   :  { %132 = vmatprep.subr.mxu0 %v2054_v20  ;;  %203 = vmatprep.subr.mxu1 %v2087_v31  ;;  %v2120_v42 = vld [vmem:[#allocation7 + $0x80] sm:$0xff]  ;;  %v2123_v43 = vld [vmem:[#allocation7 + $0xd8] sm:$0xff]  ;;  %v2126_v44 = vld [vmem:[#allocation7 + $0x68] sm:$0xff] }
  0x2c   :  { %133 = vmatpush1.msra.mxu0 %v2060_v22  ;;  %204 = vmatpush1.msra.mxu1 %v2093_v33  ;;  %2895 = vst [vmem:[#allocation18_spill] sm:$0xff] %v2120_v42  ;;  %2896 = vst [vmem:[#allocation19_spill] sm:$0xff] %v2126_v44  ;;  %v2129_v45 = vld [vmem:[#allocation7 + $0xd0] sm:$0xff]  ;;  %v2132_v46 = vld [vmem:[#allocation7 + $0x60] sm:$0xff] }
  0x2d   :  { %134 = vmatprep.subr.mxu0 %v2066_v24  ;;  %205 = vmatprep.subr.mxu1 %v2099_v35  ;;  %2897 = vst [vmem:[#allocation20_spill] sm:$0xff] %v2132_v46  ;;  %v2135_v47 = vld [vmem:[#allocation7 + $0xb8] sm:$0xff]  ;;  %v2138_v48 = vld [vmem:[#allocation7 + $0x48] sm:$0xff]  ;;  %v2141_v49 = vld [vmem:[#allocation7 + $0xb0] sm:$0xff] }
  0x2e   :  { %135 = vmatpush1.msra.mxu0 %v2072_v26  ;;  %206 = vmatpush1.msra.mxu1 %v2105_v37  ;;  %2898 = vst [vmem:[#allocation21_spill] sm:$0xff] %v2138_v48  ;;  %v2144_v50 = vld [vmem:[#allocation7 + $0x40] sm:$0xff]  ;;  %v2147_v51 = vld [vmem:[#allocation7 + $0x98] sm:$0xff]  ;;  %v2150_v52 = vld [vmem:[#allocation7 + $0x28] sm:$0xff] }
  0x2f   :  { %136 = vmatprep.subr.mxu0 %v2078_v28  ;;  %207 = vmatprep.subr.mxu1 %v2111_v39  ;;  %2899 = vst [vmem:[#allocation22_spill] sm:$0xff] %v2144_v50  ;;  %2900 = vst [vmem:[#allocation23_spill] sm:$0xff] %v2150_v52  ;;  %v2153_v53 = vld [vmem:[#allocation7 + $0x90] sm:$0xff]  ;;  %v2156_v54 = vld [vmem:[#allocation7 + $0x20] sm:$0xff] }
  0x30   :  { %137 = vmatpush1.msra.mxu0 %v2084_v30  ;;  %208 = vmatpush1.msra.mxu1 %v2117_v41  ;;  %2901 = vst [vmem:[#allocation24_spill] sm:$0xff] %v2153_v53  ;;  %2902 = vst [vmem:[#allocation25_spill] sm:$0xff] %v2156_v54  ;;  %v2159_v55 = vld [vmem:[#allocation7 + $0x78] sm:$0xff]  ;;  %v2162_v56 = vld [vmem:[#allocation7 + $0x8] sm:$0xff] }
  0x31   :  { %138 = vmatprep.subr.mxu0 %v2090_v32  ;;  %209 = vmatprep.subr.mxu1 %v2123_v43  ;;  %2903 = vst [vmem:[#allocation26_spill] sm:$0xff] %v2159_v55  ;;  %2904 = vst [vmem:[#allocation27_spill] sm:$0xff] %v2162_v56  ;;  %v2165_v57 = vld [vmem:[#allocation7 + $0x70] sm:$0xff]  ;;  %v2168_v58 = vld [vmem:[#allocation7] sm:$0xff] }
  0x32   :  { %139 = vmatpush1.msra.mxu0 %v2096_v34  ;;  %210 = vmatpush1.msra.mxu1 %v2129_v45  ;;  %2905 = vst [vmem:[#allocation28_spill] sm:$0xff] %v2165_v57  ;;  %2906 = vst [vmem:[#allocation29_spill] sm:$0xff] %v2168_v58  ;;  %v2171_v59 = vld [vmem:[#allocation7 + $0x58] sm:$0xff]  ;;  %v2175_v60 = vld [vmem:[#allocation7 + $0x50] sm:$0xff] }
  0x33   :  { %140 = vmatprep.subr.mxu0 %v2102_v36  ;;  %211 = vmatprep.subr.mxu1 %v2135_v47  ;;  %2907 = vst [vmem:[#allocation30_spill] sm:$0xff] %v2171_v59  ;;  %2908 = vst [vmem:[#allocation31_spill] sm:$0xff] %v2175_v60  ;;  %v2179_v61 = vld [vmem:[#allocation7 + $0x38] sm:$0xff]  ;;  %v2183_v62 = vld [vmem:[#allocation7 + $0x30] sm:$0xff] }
  0x34   :  { %141 = vmatpush1.msra.mxu0 %v2108_v38  ;;  %212 = vmatpush1.msra.mxu1 %v2141_v49  ;;  %2909 = vst [vmem:[#allocation32_spill] sm:$0xff] %v2179_v61  ;;  %2910 = vst [vmem:[#allocation33_spill] sm:$0xff] %v2183_v62  ;;  %v2187_v63 = vld [vmem:[#allocation7 + $0x18] sm:$0xff] }
  0x35   :  { %142 = vmatprep.subr.mxu0 %v2114_v40  ;;  %213 = vmatprep.subr.mxu1 %v2147_v51  ;;  %2911 = vst [vmem:[#allocation34_spill] sm:$0xff] %v2187_v63 }
  0x36   :  { %143 = vmatpush1.msra.mxu0 %v2120_v42  ;;  %214 = vmatpush1.msra.mxu1 %v2153_v53 }
  0x37   :  { %144 = vmatprep.subr.mxu0 %v2126_v44  ;;  %215 = vmatprep.subr.mxu1 %v2159_v55 }
  0x38   :  { %145 = vmatpush1.msra.mxu0 %v2132_v46  ;;  %216 = vmatpush1.msra.mxu1 %v2165_v57 }
  0x39   :  { %146 = vmatprep.subr.mxu0 %v2138_v48  ;;  %217 = vmatprep.subr.mxu1 %v2171_v59 }
  0x3a   :  { %147 = vmatpush1.msra.mxu0 %v2144_v50  ;;  %218 = vmatpush1.msra.mxu1 %v2175_v60 }
  0x3b   :  { %148 = vmatprep.subr.mxu0 %v2150_v52  ;;  %219 = vmatprep.subr.mxu1 %v2179_v61 }
  0x3c   :  { %149 = vmatpush1.msra.mxu0 %v2156_v54  ;;  %v2190_v54 = vld [vmem:[#allocation7 + $0x10] sm:$0xff]  ;;  %220 = vmatpush1.msra.mxu1 %v2183_v62 }
  0x3d   :  { %150 = vmatprep.subr.mxu0 %v2162_v56  ;;  %2912 = vst [vmem:[#allocation35_spill] sm:$0xff] %v2190_v54  ;;  %221 = vmatprep.subr.mxu1 %v2187_v63 }
  0x3e   :  { %151 = vmatpush1.msra.mxu0 %v2168_v58  ;;  %222 = vmatpush1.msra.mxu1 %v2190_v54 }
  0x3f   :  { %185 = vmatmul.mubr.f32.vlgmr.msra.gmra.mxu0 %v2822_v0  ;;  %307 = vmatprep.subr.mxu0 %v2002_v1 }
  0x40   :  { %308 = vmatpush1.msra.mxu0 %v2004_v2  ;;  %256 = vmatmul.mubr.f32.vlgmr.msra.gmra.mxu1 %v2822_v0  ;;  %v2913_v0 = vld [vmem:[#allocation25_spill] sm:$0xff] }
  0x41   :  { %309 = vmatprep.subr.mxu0 %v2006_v3  ;;  %378 = vmatprep.subr.mxu1 %v2023_v9 }
  0x42   :  { %310 = vmatpush1.msra.mxu0 %v2009_v4  ;;  %379 = vmatpush1.msra.mxu1 %v2029_v11 }
  0x43   :  { %311 = vmatprep.subr.mxu0 %v2012_v5  ;;  %380 = vmatprep.subr.mxu1 %v2035_v13 }
  0x44   :  { %312 = vmatpush1.msra.mxu0 %v2015_v6  ;;  %381 = vmatpush1.msra.mxu1 %v2037_v14 }
  0x45   :  { %313 = vmatprep.subr.mxu0 %v2018_v7  ;;  %382 = vmatprep.subr.mxu1 %v2043_v16 }
  0x46   :  { %314 = vmatpush1.msra.mxu0 %v2021_v8  ;;  %383 = vmatpush1.msra.mxu1 %v2049_v18 }
  0x47   :  { %315 = vmatprep.subr.mxu0 %v2026_v10  ;;  %384 = vmatprep.subr.mxu1 %v2051_v19 }
  0x48   :  { %316 = vmatpush1.msra.mxu0 %v2032_v12  ;;  %385 = vmatpush1.msra.mxu1 %v2057_v21 }
  0x49   :  { %317 = vmatprep.subr.mxu0 %v2040_v15  ;;  %386 = vmatprep.subr.mxu1 %v2063_v23 }
  0x4a   :  { %318 = vmatpush1.msra.mxu0 %v2046_v17  ;;  %387 = vmatpush1.msra.mxu1 %v2069_v25 }
  0x4b   :  { %319 = vmatprep.subr.mxu0 %v2054_v20  ;;  %388 = vmatprep.subr.mxu1 %v2075_v27 }
  0x4c   :  { %320 = vmatpush1.msra.mxu0 %v2060_v22  ;;  %389 = vmatpush1.msra.mxu1 %v2081_v29 }
  0x4d   :  { %321 = vmatprep.subr.mxu0 %v2066_v24  ;;  %390 = vmatprep.subr.mxu1 %v2087_v31 }
  0x4e   :  { %322 = vmatpush1.msra.mxu0 %v2072_v26  ;;  %391 = vmatpush1.msra.mxu1 %v2093_v33 }
  0x4f   :  { %323 = vmatprep.subr.mxu0 %v2078_v28  ;;  %392 = vmatprep.subr.mxu1 %v2099_v35 }
  0x50   :  { %324 = vmatpush1.msra.mxu0 %v2084_v30  ;;  %393 = vmatpush1.msra.mxu1 %v2105_v37 }
  0x51   :  { %325 = vmatprep.subr.mxu0 %v2090_v32  ;;  %394 = vmatprep.subr.mxu1 %v2111_v39 }
  0x52   :  { %326 = vmatpush1.msra.mxu0 %v2096_v34  ;;  %395 = vmatpush1.msra.mxu1 %v2117_v41 }
  0x53   :  { %327 = vmatprep.subr.mxu0 %v2102_v36  ;;  %396 = vmatprep.subr.mxu1 %v2123_v43 }
  0x54   :  { %328 = vmatpush1.msra.mxu0 %v2108_v38  ;;  %397 = vmatpush1.msra.mxu1 %v2129_v45 }
  0x55   :  { %329 = vmatprep.subr.mxu0 %v2114_v40  ;;  %398 = vmatprep.subr.mxu1 %v2135_v47 }
  0x56   :  { %330 = vmatpush1.msra.mxu0 %v2120_v42  ;;  %399 = vmatpush1.msra.mxu1 %v2141_v49 }
  0x57   :  { %331 = vmatprep.subr.mxu0 %v2126_v44  ;;  %400 = vmatprep.subr.mxu1 %v2147_v51 }
  0x58   :  { %332 = vmatpush1.msra.mxu0 %v2132_v46  ;;  %401 = vmatpush1.msra.mxu1 %v2153_v53 }
  0x59   :  { %333 = vmatprep.subr.mxu0 %v2138_v48  ;;  %402 = vmatprep.subr.mxu1 %v2159_v55  ;;  %v2914_v48 = vmov 0.0  }
  0x5a   :  { %334 = vmatpush1.msra.mxu0 %v2144_v50  ;;  %403 = vmatpush1.msra.mxu1 %v2165_v57 }
  0x5b   :  { %335 = vmatprep.subr.mxu0 %v2150_v52  ;;  %404 = vmatprep.subr.mxu1 %v2171_v59  ;;  %v117_v52 = vld [vmem:[#allocation4 + $0x8] sm:$0xff] }
  0x5c   :  { %336 = vmatpush1.msra.mxu0 %v2913_v0  ;;  %405 = vmatpush1.msra.mxu1 %v2175_v60  ;;  %v116_v0 = vld [vmem:[#allocation4] sm:$0xff] }
  0x5d   :  { %337 = vmatprep.subr.mxu0 %v2162_v56  ;;  %406 = vmatprep.subr.mxu1 %v2179_v61 }
  0x5e   :  { %338 = vmatpush1.msra.mxu0 %v2168_v58  ;;  %407 = vmatpush1.msra.mxu1 %v2183_v62 }
  0x5f   :  { %371 = vmatprep.mubr.f32.mxu0 %v2914_v48  ;;  %408 = vmatprep.subr.mxu1 %v2187_v63  ;;  %v119_v63 = vld [vmem:[#allocation4 + $0x18] sm:$0xff] }
  0x60   :  { %442 = vmatprep.mubr.f32.mxu1 %v2914_v48  ;;  %409 = vmatpush1.msra.mxu1 %v2190_v54  ;;  %v118_v48 = vld [vmem:[#allocation4 + $0x10] sm:$0xff] }
  0x61   :  { %495 = vmatprep.subr.mxu0 %v2002_v1  ;;  %566 = vmatprep.subr.mxu1 %v2023_v9 }
  0xff   :  { %v186_v56 = vpop.f32.mrf.mxu0 }
 0x100   :  { %v262_v61 = vadd.f32 %v186_v56, %v116_v0  ;;  %v257_v59 = vpop.f32.mrf.mxu1 }
 0x101   :  { %v188_v60 = vpop.f32.mrf.mxu0  ;;  %v264_v54 = vadd.f32 %v257_v59, %v118_v48  ;;  %v2920_v59 = vld [vmem:[#allocation21_spill] sm:$0xff] }
 0x102   :  { %v1652_v58 = vmul.f32 -1.442695, %v262_v61  ;;  %v263_v50 = vadd.f32 %v188_v60, %v117_v52  ;;  %v259_v57 = vpop.f32.mrf.mxu1 }
 0x103   :  { %v265_v46 = vadd.f32 %v259_v57, %v119_v63  ;;  %v2919_v57 = vld [vmem:[#allocation28_spill] sm:$0xff]  ;;  %v2921_v63 = vld [vmem:[#allocation30_spill] sm:$0xff] }
 0x104   :  { %1685 = vpow2.f32 %v1652_v58  ;;  %v1653_v62 = vmul.f32 -1.442695, %v263_v50 }
 0x105   :  { %v1654_v55 = vmul.f32 -1.442695, %v265_v46 }
 0x106   :  { %1687 = vpow2.f32 %v1653_v62 }
 0x107   :  { %1689 = vtanh.f32 %v264_v54  ;;  %v2917_v54 = vld [vmem:[#allocation26_spill] sm:$0xff] }
 0x108   :  { %1691 = vpow2.f32 %v1654_v55  ;;  %v2918_v55 = vld [vmem:[#allocation20_spill] sm:$0xff] }
 0x111   :  { %v1686_v1 = vpop.eup %1685 }
 0x112   :  { %v269_v44 = vadd.f32 1.0, %v1686_v1 }
 0x113   :  { %v1688_v9 = vpop.eup %1687 }
 0x114   :  { %1693 = vrcp.f32 %v269_v44  ;;  %v275_v0 = vadd.f32 1.0, %v1688_v9  ;;  %v1690_v56 = vpop.eup %1689  ;;  %v2915_v9 = vld [vmem:[#allocation24_spill] sm:$0xff]  ;;  %v2916_v44 = vld [vmem:[#allocation19_spill] sm:$0xff] }
 0x115   :  { %v1692_v52 = vpop.eup %1691 }
 0x116   :  { %1695 = vrcp.f32 %v275_v0  ;;  %v282_v60 = vadd.f32 1.0, %v1692_v52  ;;  %v2922_v0 = vld [vmem:[#allocation22_spill] sm:$0xff]  ;;  %v2924_v52 = vld [vmem:[#allocation23_spill] sm:$0xff] }
 0x118   :  { %1697 = vrcp.f32 %v282_v60  ;;  %v2927_v60 = vld [vmem:[#allocation33_spill] sm:$0xff] }
 0x121   :  { %v1694_v58 = vpop.eup %1693 }
 0x122   :  { %v286_v62 = vmul.f32 %v1694_v58, %v1690_v56  ;;  %v2923_v56 = vld [vmem:[#allocation31_spill] sm:$0xff]  ;;  %v2925_v58 = vld [vmem:[#allocation32_spill] sm:$0xff] }
 0x123   :  { %v1696_v50 = vpop.eup %1695 }
 0x124   :  { %v285_v61 = vmul.f32 0.0, %v1696_v50  ;;  %v2926_v50 = vld [vmem:[#allocation25_spill] sm:$0xff] }
 0x125   :  { %v1698_v46 = vpop.eup %1697 }
 0x126   :  { %v2264_v53 = vadd.f32 %v286_v62, %v285_v61  ;;  %v2928_v61 = vld [vmem:[#allocation27_spill] sm:$0xff]  ;;  %v2929_v62 = vld [vmem:[#allocation34_spill] sm:$0xff] }
 0x128   :  { %1699 = vtanh.f32 %v2264_v53 }
 0x135   :  { %v1700_v1 = vpop.eup %1699 }
 0x136   :  { %v289_v48 = vmul.f32 %v1700_v1, %v1698_v46  ;;  %v2930_v46 = vld [vmem:[#allocation29_spill] sm:$0xff]  ;;  %v2931_v1 = vmov 0.0  }
 0x138   :  { %298 = vst [vmem:[#allocation9] sm:$0xff] %v289_v48  ;;  %372 = vmatmul.mubr.f32.vlgmr.msra.gmra.mxu0 %v289_v48  ;;  %443 = vmatmul.mubr.f32.vlgmr.msra.gmra.mxu1 %v289_v48  ;;  %v2932_v48 = vld [vmem:[#allocation35_spill] sm:$0xff] }
 0x139   :  { %496 = vmatpush1.msra.mxu0 %v2004_v2  ;;  %567 = vmatpush1.msra.mxu1 %v2029_v11 }
 0x13a   :  { %497 = vmatprep.subr.mxu0 %v2006_v3  ;;  %568 = vmatprep.subr.mxu1 %v2035_v13 }
 0x13b   :  { %498 = vmatpush1.msra.mxu0 %v2009_v4  ;;  %569 = vmatpush1.msra.mxu1 %v2037_v14 }
 0x13c   :  { %499 = vmatprep.subr.mxu0 %v2012_v5  ;;  %570 = vmatprep.subr.mxu1 %v2043_v16 }
 0x13d   :  { %500 = vmatpush1.msra.mxu0 %v2015_v6  ;;  %571 = vmatpush1.msra.mxu1 %v2049_v18 }
 0x13e   :  { %501 = vmatprep.subr.mxu0 %v2018_v7  ;;  %572 = vmatprep.subr.mxu1 %v2051_v19 }
 0x13f   :  { %502 = vmatpush1.msra.mxu0 %v2021_v8  ;;  %573 = vmatpush1.msra.mxu1 %v2057_v21 }
 0x140   :  { %503 = vmatprep.subr.mxu0 %v2026_v10  ;;  %574 = vmatprep.subr.mxu1 %v2063_v23 }
 0x141   :  { %504 = vmatpush1.msra.mxu0 %v2032_v12  ;;  %575 = vmatpush1.msra.mxu1 %v2069_v25 }
 0x142   :  { %505 = vmatprep.subr.mxu0 %v2040_v15  ;;  %576 = vmatprep.subr.mxu1 %v2075_v27 }
 0x143   :  { %506 = vmatpush1.msra.mxu0 %v2046_v17  ;;  %577 = vmatpush1.msra.mxu1 %v2081_v29 }
 0x144   :  { %507 = vmatprep.subr.mxu0 %v2054_v20  ;;  %578 = vmatprep.subr.mxu1 %v2087_v31 }
 0x145   :  { %508 = vmatpush1.msra.mxu0 %v2060_v22  ;;  %579 = vmatpush1.msra.mxu1 %v2093_v33 }
 0x146   :  { %509 = vmatprep.subr.mxu0 %v2066_v24  ;;  %580 = vmatprep.subr.mxu1 %v2099_v35 }
 0x147   :  { %510 = vmatpush1.msra.mxu0 %v2072_v26  ;;  %581 = vmatpush1.msra.mxu1 %v2105_v37 }
 0x148   :  { %511 = vmatprep.subr.mxu0 %v2078_v28  ;;  %582 = vmatprep.subr.mxu1 %v2111_v39 }
 0x149   :  { %512 = vmatpush1.msra.mxu0 %v2084_v30  ;;  %583 = vmatpush1.msra.mxu1 %v2117_v41 }
 0x14a   :  { %513 = vmatprep.subr.mxu0 %v2090_v32  ;;  %584 = vmatprep.subr.mxu1 %v2123_v43 }
 0x14b   :  { %514 = vmatpush1.msra.mxu0 %v2096_v34  ;;  %585 = vmatpush1.msra.mxu1 %v2129_v45 }
 0x14c   :  { %515 = vmatprep.subr.mxu0 %v2102_v36  ;;  %586 = vmatprep.subr.mxu1 %v2135_v47 }
 0x14d   :  { %516 = vmatpush1.msra.mxu0 %v2108_v38  ;;  %587 = vmatpush1.msra.mxu1 %v2141_v49 }
 0x14e   :  { %517 = vmatprep.subr.mxu0 %v2114_v40  ;;  %588 = vmatprep.subr.mxu1 %v2147_v51 }
 0x14f   :  { %518 = vmatpush1.msra.mxu0 %v2120_v42  ;;  %589 = vmatpush1.msra.mxu1 %v2915_v9 }
 0x150   :  { %519 = vmatprep.subr.mxu0 %v2916_v44  ;;  %590 = vmatprep.subr.mxu1 %v2917_v54  ;;  %v305_v54 = vld [vmem:[#allocation4 + $0x30] sm:$0xff] }
 0x151   :  { %520 = vmatpush1.msra.mxu0 %v2918_v55  ;;  %591 = vmatpush1.msra.mxu1 %v2919_v57  ;;  %v306_v57 = vld [vmem:[#allocation4 + $0x38] sm:$0xff] }
 0x152   :  { %521 = vmatprep.subr.mxu0 %v2920_v59  ;;  %592 = vmatprep.subr.mxu1 %v2921_v63 }
 0x153   :  { %522 = vmatpush1.msra.mxu0 %v2922_v0  ;;  %593 = vmatpush1.msra.mxu1 %v2923_v56  ;;  %v2933_v56 = vld [vmem:[#allocation16_spill] sm:$0xff] }
 0x154   :  { %523 = vmatprep.subr.mxu0 %v2924_v52  ;;  %594 = vmatprep.subr.mxu1 %v2925_v58  ;;  %v2934_v52 = vld [vmem:[#allocation17_spill] sm:$0xff]  ;;  %v303_v58 = vld [vmem:[#allocation4 + $0x20] sm:$0xff]  ;;  %v304_v0 = vld [vmem:[#allocation4 + $0x28] sm:$0xff] }
 0x155   :  { %524 = vmatpush1.msra.mxu0 %v2926_v50  ;;  %595 = vmatpush1.msra.mxu1 %v2927_v60 }
 0x156   :  { %525 = vmatprep.subr.mxu0 %v2928_v61  ;;  %596 = vmatprep.subr.mxu1 %v2929_v62 }
 0x157   :  { %526 = vmatpush1.msra.mxu0 %v2930_v46  ;;  %559 = vmatprep.mubr.f32.mxu0 %v2931_v1 }
 0x158   :  { %597 = vmatpush1.msra.mxu1 %v2932_v48  ;;  %630 = vmatprep.mubr.f32.mxu1 %v2931_v1 }
 0x159   :  { %683 = vmatprep.subr.mxu0 %v2933_v56  ;;  %754 = vmatprep.subr.mxu1 %v2934_v52 }
 0x1f8   :  { %v373_v50 = vpop.f32.mrf.mxu0  ;;  %v444_v62 = vpop.f32.mrf.mxu1 }
 0x1f9   :  { %v449_v60 = vadd.f32 %v373_v50, %v303_v58  ;;  %v451_v56 = vadd.f32 %v444_v62, %v305_v54  ;;  %v2940_v62 = vld [vmem:[#allocation28_spill] sm:$0xff] }
 0x1fa   :  { %v375_v63 = vpop.f32.mrf.mxu0  ;;  %v446_v55 = vpop.f32.mrf.mxu1 }
 0x1fb   :  { %v1655_v61 = vmul.f32 -1.442695, %v449_v60  ;;  %v450_v59 = vadd.f32 %v375_v63, %v304_v0  ;;  %v452_v48 = vadd.f32 %v446_v55, %v306_v57 }
 0x1fd   :  { %1701 = vpow2.f32 %v1655_v61  ;;  %v1656_v46 = vmul.f32 -1.442695, %v450_v59  ;;  %v1657_v1 = vmul.f32 -1.442695, %v452_v48  ;;  %v2943_v48 = vld [vmem:[#allocation22_spill] sm:$0xff] }
 0x1ff   :  { %1703 = vpow2.f32 %v1656_v46  ;;  %v2941_v46 = vld [vmem:[#allocation21_spill] sm:$0xff] }
 0x200   :  { %1705 = vpow2.f32 %v1657_v1  ;;  %v2942_v1 = vld [vmem:[#allocation30_spill] sm:$0xff] }
 0x20a   :  { %v1702_v44 = vpop.eup %1701 }
 0x20b   :  { %v456_v9 = vadd.f32 1.0, %v1702_v44 }
 0x20c   :  { %v1704_v52 = vpop.eup %1703 }
 0x20d   :  { %1707 = vrcp.f32 %v456_v9  ;;  %v462_v42 = vadd.f32 1.0, %v1704_v52  ;;  %v1706_v58 = vpop.eup %1705  ;;  %v2937_v9 = vld [vmem:[#allocation19_spill] sm:$0xff]  ;;  %v2939_v52 = vld [vmem:[#allocation20_spill] sm:$0xff] }
 0x20e   :  { %1709 = vtanh.f32 %v451_v56  ;;  %v469_v59 = vadd.f32 1.0, %v1706_v58  ;;  %v2938_v56 = vld [vmem:[#allocation26_spill] sm:$0xff]  ;;  %v2944_v58 = vld [vmem:[#allocation31_spill] sm:$0xff] }
 0x20f   :  { %1711 = vrcp.f32 %v462_v42  ;;  %v2935_v42 = vld [vmem:[#allocation18_spill] sm:$0xff] }
 0x210   :  { %1713 = vrcp.f32 %v469_v59  ;;  %v2948_v59 = vld [vmem:[#allocation33_spill] sm:$0xff] }
 0x21a   :  { %v1708_v63 = vpop.eup %1707 }
 0x21b   :  { %v1710_v0 = vpop.eup %1709 }
 0x21c   :  { %v1712_v50 = vpop.eup %1711  ;;  %v473_v60 = vmul.f32 %v1710_v0, %v1708_v63  ;;  %v2945_v63 = vld [vmem:[#allocation23_spill] sm:$0xff]  ;;  %v2946_v0 = vld [vmem:[#allocation32_spill] sm:$0xff] }
 0x21d   :  { %v472_v61 = vmul.f32 %v1712_v50, %v2264_v53  ;;  %v1714_v44 = vpop.eup %1713  ;;  %v2936_v53 = vld [vmem:[#allocation24_spill] sm:$0xff]  ;;  %v2947_v50 = vld [vmem:[#allocation25_spill] sm:$0xff] }
 0x21f   :  { %v2334_v55 = vadd.f32 %v473_v60, %v472_v61  ;;  %v2949_v60 = vld [vmem:[#allocation27_spill] sm:$0xff]  ;;  %v2950_v61 = vld [vmem:[#allocation34_spill] sm:$0xff] }
 0x221   :  { %1715 = vtanh.f32 %v2334_v55 }
 0x22e   :  { %v1716_v54 = vpop.eup %1715 }
 0x22f   :  { %v476_v57 = vmul.f32 %v1716_v54, %v1714_v44  ;;  %v2951_v44 = vld [vmem:[#allocation29_spill] sm:$0xff]  ;;  %v2952_v54 = vmov 0.0  }
 0x231   :  { %486 = vst [vmem:[#allocation9 + $0x8] sm:$0xff] %v476_v57  ;;  %560 = vmatmul.mubr.f32.vlgmr.msra.gmra.mxu0 %v476_v57  ;;  %631 = vmatmul.mubr.f32.vlgmr.msra.gmra.mxu1 %v476_v57  ;;  %v2953_v57 = vld [vmem:[#allocation35_spill] sm:$0xff] }
 0x232   :  { %684 = vmatpush1.msra.mxu0 %v2004_v2  ;;  %755 = vmatpush1.msra.mxu1 %v2029_v11 }
 0x233   :  { %685 = vmatprep.subr.mxu0 %v2006_v3  ;;  %756 = vmatprep.subr.mxu1 %v2035_v13 }
 0x234   :  { %686 = vmatpush1.msra.mxu0 %v2009_v4  ;;  %757 = vmatpush1.msra.mxu1 %v2037_v14 }
 0x235   :  { %687 = vmatprep.subr.mxu0 %v2012_v5  ;;  %758 = vmatprep.subr.mxu1 %v2043_v16 }
 0x236   :  { %688 = vmatpush1.msra.mxu0 %v2015_v6  ;;  %759 = vmatpush1.msra.mxu1 %v2049_v18 }
 0x237   :  { %689 = vmatprep.subr.mxu0 %v2018_v7  ;;  %760 = vmatprep.subr.mxu1 %v2051_v19 }
 0x238   :  { %690 = vmatpush1.msra.mxu0 %v2021_v8  ;;  %761 = vmatpush1.msra.mxu1 %v2057_v21 }
 0x239   :  { %691 = vmatprep.subr.mxu0 %v2026_v10  ;;  %762 = vmatprep.subr.mxu1 %v2063_v23 }
 0x23a   :  { %692 = vmatpush1.msra.mxu0 %v2032_v12  ;;  %763 = vmatpush1.msra.mxu1 %v2069_v25 }
 0x23b   :  { %693 = vmatprep.subr.mxu0 %v2040_v15  ;;  %764 = vmatprep.subr.mxu1 %v2075_v27 }
 0x23c   :  { %694 = vmatpush1.msra.mxu0 %v2046_v17  ;;  %765 = vmatpush1.msra.mxu1 %v2081_v29 }
 0x23d   :  { %695 = vmatprep.subr.mxu0 %v2054_v20  ;;  %766 = vmatprep.subr.mxu1 %v2087_v31 }
 0x23e   :  { %696 = vmatpush1.msra.mxu0 %v2060_v22  ;;  %767 = vmatpush1.msra.mxu1 %v2093_v33 }
 0x23f   :  { %697 = vmatprep.subr.mxu0 %v2066_v24  ;;  %768 = vmatprep.subr.mxu1 %v2099_v35 }
 0x240   :  { %698 = vmatpush1.msra.mxu0 %v2072_v26  ;;  %769 = vmatpush1.msra.mxu1 %v2105_v37 }
 0x241   :  { %699 = vmatprep.subr.mxu0 %v2078_v28  ;;  %770 = vmatprep.subr.mxu1 %v2111_v39 }
 0x242   :  { %700 = vmatpush1.msra.mxu0 %v2084_v30  ;;  %771 = vmatpush1.msra.mxu1 %v2117_v41 }
 0x243   :  { %701 = vmatprep.subr.mxu0 %v2090_v32  ;;  %772 = vmatprep.subr.mxu1 %v2123_v43 }
 0x244   :  { %702 = vmatpush1.msra.mxu0 %v2096_v34  ;;  %773 = vmatpush1.msra.mxu1 %v2129_v45 }
 0x245   :  { %703 = vmatprep.subr.mxu0 %v2102_v36  ;;  %774 = vmatprep.subr.mxu1 %v2135_v47 }
 0x246   :  { %704 = vmatpush1.msra.mxu0 %v2108_v38  ;;  %775 = vmatpush1.msra.mxu1 %v2141_v49 }
 0x247   :  { %705 = vmatprep.subr.mxu0 %v2114_v40  ;;  %776 = vmatprep.subr.mxu1 %v2147_v51 }
 0x248   :  { %706 = vmatpush1.msra.mxu0 %v2935_v42  ;;  %777 = vmatpush1.msra.mxu1 %v2936_v53 }
 0x249   :  { %707 = vmatprep.subr.mxu0 %v2937_v9  ;;  %778 = vmatprep.subr.mxu1 %v2938_v56  ;;  %v493_v56 = vld [vmem:[#allocation4 + $0x50] sm:$0xff] }
 0x24a   :  { %708 = vmatpush1.msra.mxu0 %v2939_v52  ;;  %779 = vmatpush1.msra.mxu1 %v2940_v62  ;;  %v494_v62 = vld [vmem:[#allocation4 + $0x58] sm:$0xff] }
 0x24b   :  { %709 = vmatprep.subr.mxu0 %v2941_v46  ;;  %780 = vmatprep.subr.mxu1 %v2942_v1 }
 0x24c   :  { %710 = vmatpush1.msra.mxu0 %v2943_v48  ;;  %781 = vmatpush1.msra.mxu1 %v2944_v58  ;;  %v2954_v58 = vld [vmem:[#allocation16_spill] sm:$0xff] }
 0x24d   :  { %711 = vmatprep.subr.mxu0 %v2945_v63  ;;  %782 = vmatprep.subr.mxu1 %v2946_v0  ;;  %v2955_v63 = vld [vmem:[#allocation17_spill] sm:$0xff]  ;;  %v491_v0 = vld [vmem:[#allocation4 + $0x40] sm:$0xff]  ;;  %v492_v48 = vld [vmem:[#allocation4 + $0x48] sm:$0xff] }
 0x24e   :  { %712 = vmatpush1.msra.mxu0 %v2947_v50  ;;  %783 = vmatpush1.msra.mxu1 %v2948_v59 }
 0x24f   :  { %713 = vmatprep.subr.mxu0 %v2949_v60  ;;  %784 = vmatprep.subr.mxu1 %v2950_v61 }
 0x250   :  { %714 = vmatpush1.msra.mxu0 %v2951_v44  ;;  %747 = vmatprep.mubr.f32.mxu0 %v2952_v54 }
 0x251   :  { %785 = vmatpush1.msra.mxu1 %v2953_v57  ;;  %818 = vmatprep.mubr.f32.mxu1 %v2952_v54 }
 0x252   :  { %871 = vmatprep.subr.mxu0 %v2954_v58  ;;  %942 = vmatprep.subr.mxu1 %v2955_v63 }
 0x2f1   :  { %v561_v50 = vpop.f32.mrf.mxu0  ;;  %v632_v61 = vpop.f32.mrf.mxu1 }
 0x2f2   :  { %v637_v59 = vadd.f32 %v561_v50, %v491_v0  ;;  %v639_v58 = vadd.f32 %v632_v61, %v493_v56 }
 0x2f3   :  { %v563_v1 = vpop.f32.mrf.mxu0  ;;  %v634_v52 = vpop.f32.mrf.mxu1 }
 0x2f4   :  { %v1658_v60 = vmul.f32 -1.442695, %v637_v59  ;;  %v638_v46 = vadd.f32 %v563_v1, %v492_v48  ;;  %v640_v57 = vadd.f32 %v634_v52, %v494_v62 }
 0x2f6   :  { %1717 = vpow2.f32 %v1658_v60  ;;  %v1659_v44 = vmul.f32 -1.442695, %v638_v46  ;;  %v1660_v54 = vmul.f32 -1.442695, %v640_v57 }
 0x2f8   :  { %1719 = vpow2.f32 %v1659_v44 }
 0x2f9   :  { %1721 = vpow2.f32 %v1660_v54 }
 0x303   :  { %v1718_v9 = vpop.eup %1717 }
 0x304   :  { %v644_v53 = vadd.f32 1.0, %v1718_v9 }
 0x305   :  { %v1720_v63 = vpop.eup %1719 }
 0x306   :  { %1723 = vrcp.f32 %v644_v53  ;;  %v650_v42 = vadd.f32 1.0, %v1720_v63  ;;  %v1722_v0 = vpop.eup %1721 }
 0x307   :  { %1725 = vtanh.f32 %v639_v58  ;;  %v657_v46 = vadd.f32 1.0, %v1722_v0  ;;  %v2479_v0 = vld [vmem:[#allocation7 + $0x1e0] sm:$0xff] }
 0x308   :  { %1727 = vrcp.f32 %v650_v42 }
 0x309   :  { %1729 = vrcp.f32 %v657_v46  ;;  %v2491_v46 = vld [vmem:[#allocation7 + $0x1c0] sm:$0xff] }
 0x313   :  { %v1724_v1 = vpop.eup %1723 }
 0x314   :  { %v1726_v48 = vpop.eup %1725 }
 0x315   :  { %v1728_v50 = vpop.eup %1727  ;;  %v661_v59 = vmul.f32 %v1726_v48, %v1724_v1  ;;  %v2482_v1 = vld [vmem:[#allocation7 + $0x1f0] sm:$0xff]  ;;  %v2485_v48 = vld [vmem:[#allocation7 + $0x1c8] sm:$0xff] }
 0x316   :  { %v660_v60 = vmul.f32 %v1728_v50, %v2334_v55  ;;  %v1730_v9 = vpop.eup %1729  ;;  %v2488_v50 = vld [vmem:[#allocation7 + $0x1d8] sm:$0xff] }
 0x318   :  { %v2404_v52 = vadd.f32 %v661_v59, %v660_v60  ;;  %v2494_v59 = vld [vmem:[#allocation7 + $0x1d0] sm:$0xff]  ;;  %v2497_v60 = vld [vmem:[#allocation7 + $0x1a8] sm:$0xff] }
 0x31a   :  { %1731 = vtanh.f32 %v2404_v52 }
 0x327   :  { %v1732_v56 = vpop.eup %1731 }
 0x328   :  { %v664_v62 = vmul.f32 %v1732_v56, %v1730_v9  ;;  %v2503_v9 = vld [vmem:[#allocation7 + $0x1a0] sm:$0xff]  ;;  %v2506_v56 = vld [vmem:[#allocation7 + $0x1b0] sm:$0xff] }
 0x32a   :  { %674 = vst [vmem:[#allocation9 + $0x10] sm:$0xff] %v664_v62  ;;  %748 = vmatmul.mubr.f32.vlgmr.msra.gmra.mxu0 %v664_v62  ;;  %819 = vmatmul.mubr.f32.vlgmr.msra.gmra.mxu1 %v664_v62  ;;  %v2509_v62 = vld [vmem:[#allocation7 + $0x188] sm:$0xff] }
 0x32b   :  { %872 = vmatpush1.msra.mxu0 %v2004_v2  ;;  %943 = vmatpush1.msra.mxu1 %v2029_v11  ;;  %v2956_v2 = vld [vmem:[#allocation18_spill] sm:$0xff] }
 0x32c   :  { %873 = vmatprep.subr.mxu0 %v2006_v3  ;;  %944 = vmatprep.subr.mxu1 %v2035_v13  ;;  %v2957_v3 = vld [vmem:[#allocation24_spill] sm:$0xff]  ;;  %v2964_v11 = vld [vmem:[#allocation22_spill] sm:$0xff]  ;;  %v2966_v13 = vld [vmem:[#allocation23_spill] sm:$0xff] }
 0x32d   :  { %874 = vmatpush1.msra.mxu0 %v2009_v4  ;;  %945 = vmatpush1.msra.mxu1 %v2037_v14  ;;  %v2958_v4 = vld [vmem:[#allocation19_spill] sm:$0xff]  ;;  %v2967_v14 = vld [vmem:[#allocation32_spill] sm:$0xff] }
 0x32e   :  { %875 = vmatprep.subr.mxu0 %v2012_v5  ;;  %946 = vmatprep.subr.mxu1 %v2043_v16  ;;  %v2959_v5 = vld [vmem:[#allocation26_spill] sm:$0xff]  ;;  %v2969_v16 = vld [vmem:[#allocation33_spill] sm:$0xff] }
 0x32f   :  { %876 = vmatpush1.msra.mxu0 %v2015_v6  ;;  %947 = vmatpush1.msra.mxu1 %v2049_v18  ;;  %v2960_v6 = vld [vmem:[#allocation20_spill] sm:$0xff]  ;;  %v2971_v18 = vld [vmem:[#allocation34_spill] sm:$0xff] }
 0x330   :  { %877 = vmatprep.subr.mxu0 %v2018_v7  ;;  %948 = vmatprep.subr.mxu1 %v2051_v19  ;;  %v2961_v7 = vld [vmem:[#allocation28_spill] sm:$0xff]  ;;  %v2972_v19 = vld [vmem:[#allocation29_spill] sm:$0xff] }
 0x331   :  { %878 = vmatpush1.msra.mxu0 %v2021_v8  ;;  %949 = vmatpush1.msra.mxu1 %v2057_v21  ;;  %v2962_v8 = vld [vmem:[#allocation21_spill] sm:$0xff]  ;;  %v2974_v21 = vld [vmem:[#allocation35_spill] sm:$0xff] }
 0x332   :  { %879 = vmatprep.subr.mxu0 %v2026_v10  ;;  %950 = vmatprep.subr.mxu1 %v2063_v23  ;;  %v2963_v10 = vld [vmem:[#allocation30_spill] sm:$0xff]  ;;  %v2976_v23 = vld [vmem:[#allocation17_spill] sm:$0xff] }
 0x333   :  { %880 = vmatpush1.msra.mxu0 %v2032_v12  ;;  %951 = vmatpush1.msra.mxu1 %v2069_v25  ;;  %v2965_v12 = vld [vmem:[#allocation31_spill] sm:$0xff] }
 0x334   :  { %881 = vmatprep.subr.mxu0 %v2040_v15  ;;  %952 = vmatprep.subr.mxu1 %v2075_v27  ;;  %v2968_v15 = vld [vmem:[#allocation25_spill] sm:$0xff] }
 0x335   :  { %882 = vmatpush1.msra.mxu0 %v2046_v17  ;;  %953 = vmatpush1.msra.mxu1 %v2081_v29  ;;  %v2970_v17 = vld [vmem:[#allocation27_spill] sm:$0xff] }
 0x336   :  { %883 = vmatprep.subr.mxu0 %v2054_v20  ;;  %954 = vmatprep.subr.mxu1 %v2087_v31  ;;  %v2973_v20 = vmov 0.0  }
 0x337   :  { %884 = vmatpush1.msra.mxu0 %v2060_v22  ;;  %955 = vmatpush1.msra.mxu1 %v2093_v33  ;;  %v2471_v22 = vld [vmem:[#allocation7 + $0x1e8] sm:$0xff]  ;;  %v682_v33 = vld [vmem:[#allocation4 + $0x78] sm:$0xff] }
 0x338   :  { %885 = vmatprep.subr.mxu0 %v2066_v24  ;;  %956 = vmatprep.subr.mxu1 %v2099_v35  ;;  %2975 = vst [vmem:[#allocation16_spill] sm:$0xff] %v2471_v22  ;;  %v679_v24 = vld [vmem:[#allocation4 + $0x60] sm:$0xff] }
 0x339   :  { %886 = vmatpush1.msra.mxu0 %v2072_v26  ;;  %957 = vmatpush1.msra.mxu1 %v2105_v37  ;;  %v680_v26 = vld [vmem:[#allocation4 + $0x68] sm:$0xff] }
 0x33a   :  { %887 = vmatprep.subr.mxu0 %v2078_v28  ;;  %958 = vmatprep.subr.mxu1 %v2111_v39 }
 0x33b   :  { %888 = vmatpush1.msra.mxu0 %v2084_v30  ;;  %959 = vmatpush1.msra.mxu1 %v2117_v41 }
 0x33c   :  { %889 = vmatprep.subr.mxu0 %v2090_v32  ;;  %960 = vmatprep.subr.mxu1 %v2123_v43 }
 0x33d   :  { %890 = vmatpush1.msra.mxu0 %v2096_v34  ;;  %961 = vmatpush1.msra.mxu1 %v2129_v45 }
 0x33e   :  { %891 = vmatprep.subr.mxu0 %v2102_v36  ;;  %962 = vmatprep.subr.mxu1 %v2135_v47  ;;  %v681_v36 = vld [vmem:[#allocation4 + $0x70] sm:$0xff] }
 0x33f   :  { %892 = vmatpush1.msra.mxu0 %v2108_v38  ;;  %963 = vmatpush1.msra.mxu1 %v2141_v49 }
 0x340   :  { %893 = vmatprep.subr.mxu0 %v2114_v40  ;;  %964 = vmatprep.subr.mxu1 %v2147_v51 }
 0x341   :  { %894 = vmatpush1.msra.mxu0 %v2956_v2  ;;  %965 = vmatpush1.msra.mxu1 %v2957_v3  ;;  %v2512_v2 = vld [vmem:[#allocation7 + $0x198] sm:$0xff] }
 0x342   :  { %895 = vmatprep.subr.mxu0 %v2958_v4  ;;  %966 = vmatprep.subr.mxu1 %v2959_v5  ;;  %v2515_v4 = vld [vmem:[#allocation7 + $0x180] sm:$0xff] }
 0x343   :  { %896 = vmatpush1.msra.mxu0 %v2960_v6  ;;  %967 = vmatpush1.msra.mxu1 %v2961_v7  ;;  %v2518_v6 = vld [vmem:[#allocation7 + $0x190] sm:$0xff] }
 0x344   :  { %897 = vmatprep.subr.mxu0 %v2962_v8  ;;  %968 = vmatprep.subr.mxu1 %v2963_v10  ;;  %v2521_v8 = vld [vmem:[#allocation7 + $0x168] sm:$0xff] }
 0x345   :  { %898 = vmatpush1.msra.mxu0 %v2964_v11  ;;  %969 = vmatpush1.msra.mxu1 %v2965_v12  ;;  %v2524_v11 = vld [vmem:[#allocation7 + $0x178] sm:$0xff] }
 0x346   :  { %899 = vmatprep.subr.mxu0 %v2966_v13  ;;  %970 = vmatprep.subr.mxu1 %v2967_v14  ;;  %v2527_v13 = vld [vmem:[#allocation7 + $0x160] sm:$0xff] }
 0x347   :  { %900 = vmatpush1.msra.mxu0 %v2968_v15  ;;  %971 = vmatpush1.msra.mxu1 %v2969_v16  ;;  %v2530_v15 = vld [vmem:[#allocation7 + $0x170] sm:$0xff] }
 0x348   :  { %901 = vmatprep.subr.mxu0 %v2970_v17  ;;  %972 = vmatprep.subr.mxu1 %v2971_v18  ;;  %v2533_v17 = vld [vmem:[#allocation7 + $0x148] sm:$0xff] }
 0x349   :  { %902 = vmatpush1.msra.mxu0 %v2972_v19  ;;  %935 = vmatprep.mubr.f32.mxu0 %v2973_v20 }
 0x34a   :  { %973 = vmatpush1.msra.mxu1 %v2974_v21  ;;  %1006 = vmatprep.mubr.f32.mxu1 %v2973_v20 }
 0x34b   :  { %1059 = vmatprep.subr.mxu0 %v2471_v22  ;;  %1130 = vmatprep.subr.mxu1 %v2976_v23  ;;  %v2536_v23 = vld [vmem:[#allocation7 + $0x158] sm:$0xff] }
 0x3ea   :  { %v749_v25 = vpop.f32.mrf.mxu0  ;;  %v820_v31 = vpop.f32.mrf.mxu1 }
 0x3eb   :  { %v825_v27 = vadd.f32 %v749_v25, %v679_v24  ;;  %v827_v39 = vadd.f32 %v820_v31, %v681_v36  ;;  %v2539_v24 = vld [vmem:[#allocation7 + $0x140] sm:$0xff]  ;;  %v2542_v25 = vld [vmem:[#allocation7 + $0x150] sm:$0xff]  ;;  %v2560_v31 = vld [vmem:[#allocation7 + $0x118] sm:$0xff] }
 0x3ec   :  { %v751_v28 = vpop.f32.mrf.mxu0  ;;  %v822_v34 = vpop.f32.mrf.mxu1  ;;  %v2575_v36 = vld [vmem:[#allocation7 + $0xe0] sm:$0xff] }
 0x3ed   :  { %v1661_v29 = vmul.f32 -1.442695, %v825_v27  ;;  %v826_v30 = vadd.f32 %v751_v28, %v680_v26  ;;  %v828_v35 = vadd.f32 %v822_v34, %v682_v33  ;;  %v2545_v26 = vld [vmem:[#allocation7 + $0x128] sm:$0xff]  ;;  %v2548_v27 = vld [vmem:[#allocation7 + $0x138] sm:$0xff]  ;;  %v2551_v28 = vld [vmem:[#allocation7 + $0x120] sm:$0xff] }
 0x3ee   :  { %v2566_v33 = vld [vmem:[#allocation7 + $0x110] sm:$0xff]  ;;  %v2569_v34 = vld [vmem:[#allocation7 + $0xe8] sm:$0xff] }
 0x3ef   :  { %1733 = vpow2.f32 %v1661_v29  ;;  %v1662_v32 = vmul.f32 -1.442695, %v826_v30  ;;  %v1663_v37 = vmul.f32 -1.442695, %v828_v35  ;;  %v2554_v29 = vld [vmem:[#allocation7 + $0x130] sm:$0xff]  ;;  %v2557_v30 = vld [vmem:[#allocation7 + $0x108] sm:$0xff] }
 0x3f0   :  { %v2572_v35 = vld [vmem:[#allocation7 + $0xf8] sm:$0xff] }
 0x3f1   :  { %1735 = vpow2.f32 %v1662_v32  ;;  %v2563_v32 = vld [vmem:[#allocation7 + $0x100] sm:$0xff] }
 0x3f2   :  { %1737 = vpow2.f32 %v1663_v37  ;;  %v2578_v37 = vld [vmem:[#allocation7 + $0xf0] sm:$0xff] }
 0x3fc   :  { %v1734_v38 = vpop.eup %1733 }
 0x3fd   :  { %v832_v40 = vadd.f32 1.0, %v1734_v38  ;;  %v2581_v38 = vld [vmem:[#allocation7 + $0xc8] sm:$0xff] }
 0x3fe   :  { %v1736_v41 = vpop.eup %1735 }
 0x3ff   :  { %1739 = vrcp.f32 %v832_v40  ;;  %v838_v43 = vadd.f32 1.0, %v1736_v41  ;;  %v1738_v45 = vpop.eup %1737  ;;  %v2587_v40 = vld [vmem:[#allocation7 + $0xc0] sm:$0xff]  ;;  %v2590_v41 = vld [vmem:[#allocation7 + $0xd0] sm:$0xff] }
 0x400   :  { %1741 = vtanh.f32 %v827_v39  ;;  %v845_v53 = vadd.f32 1.0, %v1738_v45  ;;  %v2584_v39 = vld [vmem:[#allocation7 + $0xd8] sm:$0xff] }
 0x401   :  { %1743 = vrcp.f32 %v838_v43  ;;  %v2593_v43 = vld [vmem:[#allocation7 + $0xa8] sm:$0xff]  ;;  %v2596_v45 = vld [vmem:[#allocation7 + $0xb8] sm:$0xff] }
 0x402   :  { %1745 = vrcp.f32 %v845_v53  ;;  %v2611_v53 = vld [vmem:[#allocation7 + $0x68] sm:$0xff] }
 0x403   :  { %2978 = vst [vmem:[#allocation24_spill] sm:$0xff] %v2611_v53 }
 0x40c   :  { %v1740_v47 = vpop.eup %1739 }
 0x40d   :  { %v1742_v55 = vpop.eup %1741 }
 0x40e   :  { %v1744_v42 = vpop.eup %1743  ;;  %v849_v63 = vmul.f32 %v1742_v55, %v1740_v47  ;;  %v2599_v47 = vld [vmem:[#allocation7 + $0xa0] sm:$0xff]  ;;  %v2603_v55 = vld [vmem:[#allocation7 + $0x88] sm:$0xff] }
 0x40f   :  { %v848_v61 = vmul.f32 %v1744_v42, %v2404_v52  ;;  %v1746_v54 = vpop.eup %1745  ;;  %v2500_v52 = vld [vmem:[#allocation7 + $0x1b8] sm:$0xff]  ;;  %v2607_v42 = vld [vmem:[#allocation7 + $0x80] sm:$0xff] }
 0x410   :  { %2977 = vst [vmem:[#allocation18_spill] sm:$0xff] %v2607_v42 }
 0x411   :  { %v2476_v44 = vadd.f32 %v849_v63, %v848_v61  ;;  %v2615_v63 = vld [vmem:[#allocation7 + $0x60] sm:$0xff] }
 0x412   :  { %2979 = vst [vmem:[#allocation19_spill] sm:$0xff] %v2615_v63 }
 0x413   :  { %1747 = vtanh.f32 %v2476_v44 }
 0x420   :  { %v1748_v57 = vpop.eup %1747 }
 0x421   :  { %v852_v58 = vmul.f32 %v1748_v57, %v1746_v54 }
 0x423   :  { %862 = vst [vmem:[#allocation9 + $0x18] sm:$0xff] %v852_v58  ;;  %936 = vmatmul.mubr.f32.vlgmr.msra.gmra.mxu0 %v852_v58  ;;  %1007 = vmatmul.mubr.f32.vlgmr.msra.gmra.mxu1 %v852_v58 }
 0x424   :  { %1060 = vmatpush1.msra.mxu0 %v2479_v0  ;;  %1131 = vmatpush1.msra.mxu1 %v2482_v1 }
 0x425   :  { %1061 = vmatprep.subr.mxu0 %v2485_v48  ;;  %1132 = vmatprep.subr.mxu1 %v2488_v50 }
 0x426   :  { %1062 = vmatpush1.msra.mxu0 %v2491_v46  ;;  %1133 = vmatpush1.msra.mxu1 %v2494_v59 }
 0x427   :  { %1063 = vmatprep.subr.mxu0 %v2497_v60  ;;  %1134 = vmatprep.subr.mxu1 %v2500_v52 }
 0x428   :  { %1064 = vmatpush1.msra.mxu0 %v2503_v9  ;;  %1135 = vmatpush1.msra.mxu1 %v2506_v56 }
 0x429   :  { %1065 = vmatprep.subr.mxu0 %v2509_v62  ;;  %1136 = vmatprep.subr.mxu1 %v2512_v2 }
 0x42a   :  { %1066 = vmatpush1.msra.mxu0 %v2515_v4  ;;  %1137 = vmatpush1.msra.mxu1 %v2518_v6 }
 0x42b   :  { %1067 = vmatprep.subr.mxu0 %v2521_v8  ;;  %1138 = vmatprep.subr.mxu1 %v2524_v11 }
 0x42c   :  { %1068 = vmatpush1.msra.mxu0 %v2527_v13  ;;  %1139 = vmatpush1.msra.mxu1 %v2530_v15 }
 0x42d   :  { %1069 = vmatprep.subr.mxu0 %v2533_v17  ;;  %1140 = vmatprep.subr.mxu1 %v2536_v23 }
 0x42e   :  { %1070 = vmatpush1.msra.mxu0 %v2539_v24  ;;  %1141 = vmatpush1.msra.mxu1 %v2542_v25 }
 0x42f   :  { %1071 = vmatprep.subr.mxu0 %v2545_v26  ;;  %1142 = vmatprep.subr.mxu1 %v2548_v27 }
 0x430   :  { %1072 = vmatpush1.msra.mxu0 %v2551_v28  ;;  %1143 = vmatpush1.msra.mxu1 %v2554_v29 }
 0x431   :  { %1073 = vmatprep.subr.mxu0 %v2557_v30  ;;  %1144 = vmatprep.subr.mxu1 %v2560_v31 }
 0x432   :  { %1074 = vmatpush1.msra.mxu0 %v2563_v32  ;;  %1145 = vmatpush1.msra.mxu1 %v2566_v33 }
 0x433   :  { %1075 = vmatprep.subr.mxu0 %v2569_v34  ;;  %1146 = vmatprep.subr.mxu1 %v2572_v35 }
 0x434   :  { %1076 = vmatpush1.msra.mxu0 %v2575_v36  ;;  %1147 = vmatpush1.msra.mxu1 %v2578_v37 }
 0x435   :  { %1077 = vmatprep.subr.mxu0 %v2581_v38  ;;  %1148 = vmatprep.subr.mxu1 %v2584_v39 }
 0x436   :  { %1078 = vmatpush1.msra.mxu0 %v2587_v40  ;;  %1149 = vmatpush1.msra.mxu1 %v2590_v41 }
 0x437   :  { %1079 = vmatprep.subr.mxu0 %v2593_v43  ;;  %1150 = vmatprep.subr.mxu1 %v2596_v45 }
 0x438   :  { %1080 = vmatpush1.msra.mxu0 %v2599_v47  ;;  %1151 = vmatpush1.msra.mxu1 %v2141_v49  ;;  %v2619_v49 = vld [vmem:[#allocation7 + $0x48] sm:$0xff] }
 0x439   :  { %1081 = vmatprep.subr.mxu0 %v2603_v55  ;;  %1152 = vmatprep.subr.mxu1 %v2147_v51  ;;  %2980 = vst [vmem:[#allocation26_spill] sm:$0xff] %v2619_v49  ;;  %v2623_v51 = vld [vmem:[#allocation7 + $0x40] sm:$0xff] }
 0x43a   :  { %1082 = vmatpush1.msra.mxu0 %v2607_v42  ;;  %1153 = vmatpush1.msra.mxu1 %v2957_v3  ;;  %2981 = vst [vmem:[#allocation20_spill] sm:$0xff] %v2623_v51  ;;  %v2627_v3 = vld [vmem:[#allocation7 + $0x28] sm:$0xff] }
 0x43b   :  { %1083 = vmatprep.subr.mxu0 %v2611_v53  ;;  %1154 = vmatprep.subr.mxu1 %v2959_v5  ;;  %2982 = vst [vmem:[#allocation28_spill] sm:$0xff] %v2627_v3  ;;  %v2631_v5 = vld [vmem:[#allocation7 + $0x20] sm:$0xff] }
 0x43c   :  { %1084 = vmatpush1.msra.mxu0 %v2615_v63  ;;  %1155 = vmatpush1.msra.mxu1 %v2961_v7  ;;  %2983 = vst [vmem:[#allocation21_spill] sm:$0xff] %v2631_v5  ;;  %v2635_v7 = vld [vmem:[#allocation7 + $0x8] sm:$0xff] }
 0x43d   :  { %1085 = vmatprep.subr.mxu0 %v2619_v49  ;;  %1156 = vmatprep.subr.mxu1 %v2963_v10  ;;  %2984 = vst [vmem:[#allocation30_spill] sm:$0xff] %v2635_v7  ;;  %v2644_v10 = vld [vmem:[#allocation7 + $0x1f8] sm:$0xff] }
 0x43e   :  { %1086 = vmatpush1.msra.mxu0 %v2623_v51  ;;  %1157 = vmatpush1.msra.mxu1 %v2965_v12  ;;  %2985 = vst [vmem:[#allocation22_spill] sm:$0xff] %v2644_v10  ;;  %v867_v12 = vld [vmem:[#allocation4 + $0x80] sm:$0xff] }
 0x43f   :  { %1087 = vmatprep.subr.mxu0 %v2627_v3  ;;  %1158 = vmatprep.subr.mxu1 %v2967_v14 }
 0x440   :  { %1088 = vmatpush1.msra.mxu0 %v2631_v5  ;;  %1159 = vmatpush1.msra.mxu1 %v2969_v16  ;;  %v868_v16 = vld [vmem:[#allocation4 + $0x88] sm:$0xff]  ;;  %v869_v5 = vld [vmem:[#allocation4 + $0x90] sm:$0xff] }
 0x441   :  { %1089 = vmatprep.subr.mxu0 %v2635_v7  ;;  %1160 = vmatprep.subr.mxu1 %v2971_v18 }
 0x442   :  { %1090 = vmatpush1.msra.mxu0 %v2972_v19  ;;  %1123 = vmatprep.mubr.f32.mxu0 %v2973_v20 }
 0x443   :  { %1161 = vmatpush1.msra.mxu1 %v2974_v21  ;;  %1194 = vmatprep.mubr.f32.mxu1 %v2973_v20  ;;  %v870_v21 = vld [vmem:[#allocation4 + $0x98] sm:$0xff] }
 0x444   :  { %1247 = vmatprep.subr.mxu0 %v2471_v22  ;;  %1318 = vmatprep.subr.mxu1 %v2644_v10 }
 0x4e3   :  { %v937_v14 = vpop.f32.mrf.mxu0  ;;  %v1008_v19 = vpop.f32.mrf.mxu1 }
 0x4e4   :  { %v1013_v61 = vadd.f32 %v937_v14, %v867_v12  ;;  %v1015_v51 = vadd.f32 %v1008_v19, %v869_v5  ;;  %v2988_v5 = vld [vmem:[#allocation19_spill] sm:$0xff]  ;;  %v2990_v19 = vld [vmem:[#allocation26_spill] sm:$0xff] }
 0x4e5   :  { %v939_v54 = vpop.f32.mrf.mxu0  ;;  %v1010_v7 = vpop.f32.mrf.mxu1 }
 0x4e6   :  { %v1664_v18 = vmul.f32 -1.442695, %v1013_v61  ;;  %v1014_v57 = vadd.f32 %v939_v54, %v868_v16  ;;  %v1016_v20 = vadd.f32 %v1010_v7, %v870_v21  ;;  %v2992_v21 = vld [vmem:[#allocation20_spill] sm:$0xff] }
 0x4e8   :  { %1749 = vpow2.f32 %v1664_v18  ;;  %v1665_v58 = vmul.f32 -1.442695, %v1014_v57  ;;  %v1666_v22 = vmul.f32 -1.442695, %v1016_v20 }
 0x4ea   :  { %1751 = vpow2.f32 %v1665_v58  ;;  %v2712_v58 = vld [vmem:[#allocation7 + $0x58] sm:$0xff] }
 0x4eb   :  { %1753 = vpow2.f32 %v1666_v22  ;;  %2991 = vst [vmem:[#allocation25_spill] sm:$0xff] %v2712_v58 }
 0x4f5   :  { %v1750_v3 = vpop.eup %1749 }
 0x4f6   :  { %v1020_v49 = vadd.f32 1.0, %v1750_v3 }
 0x4f7   :  { %v1752_v10 = vpop.eup %1751 }
 0x4f8   :  { %1755 = vrcp.f32 %v1020_v49  ;;  %v1026_v63 = vadd.f32 1.0, %v1752_v10  ;;  %v1754_v12 = vpop.eup %1753  ;;  %v2700_v49 = vld [vmem:[#allocation7 + $0x90] sm:$0xff] }
 0x4f9   :  { %1757 = vtanh.f32 %v1015_v51  ;;  %v1033_v54 = vadd.f32 1.0, %v1754_v12  ;;  %2986 = vst [vmem:[#allocation31_spill] sm:$0xff] %v2700_v49  ;;  %v2704_v51 = vld [vmem:[#allocation7 + $0x78] sm:$0xff]  ;;  %v2708_v10 = vld [vmem:[#allocation7 + $0x70] sm:$0xff] }
 0x4fa   :  { %1759 = vrcp.f32 %v1026_v63  ;;  %v2696_v63 = vld [vmem:[#allocation7 + $0x98] sm:$0xff]  ;;  %2987 = vst [vmem:[#allocation23_spill] sm:$0xff] %v2704_v51  ;;  %2989 = vst [vmem:[#allocation32_spill] sm:$0xff] %v2708_v10  ;;  %v2716_v12 = vld [vmem:[#allocation7 + $0x50] sm:$0xff] }
 0x4fb   :  { %1761 = vrcp.f32 %v1033_v54  ;;  %2993 = vst [vmem:[#allocation33_spill] sm:$0xff] %v2716_v12  ;;  %v2724_v54 = vld [vmem:[#allocation7 + $0x30] sm:$0xff] }
 0x4fc   :  { %2997 = vst [vmem:[#allocation34_spill] sm:$0xff] %v2724_v54 }
 0x505   :  { %v1756_v14 = vpop.eup %1755 }
 0x506   :  { %v1758_v16 = vpop.eup %1757 }
 0x507   :  { %v1760_v61 = vpop.eup %1759  ;;  %v1037_v18 = vmul.f32 %v1758_v16, %v1756_v14  ;;  %v2994_v14 = vld [vmem:[#allocation28_spill] sm:$0xff]  ;;  %v2720_v16 = vld [vmem:[#allocation7 + $0x38] sm:$0xff] }
 0x508   :  { %v1036_v57 = vmul.f32 %v1760_v61, %v2476_v44  ;;  %v1762_v20 = vpop.eup %1761  ;;  %v2692_v44 = vld [vmem:[#allocation7 + $0xb0] sm:$0xff]  ;;  %2995 = vst [vmem:[#allocation27_spill] sm:$0xff] %v2720_v16 }
 0x509   :  { %v2996_v61 = vld [vmem:[#allocation21_spill] sm:$0xff] }
 0x50a   :  { %v2648_v7 = vadd.f32 %v1037_v18, %v1036_v57  ;;  %v2998_v18 = vld [vmem:[#allocation30_spill] sm:$0xff] }
 0x50b   :  { %v2728_v57 = vld [vmem:[#allocation7 + $0x18] sm:$0xff] }
 0x50c   :  { %1763 = vtanh.f32 %v2648_v7  ;;  %2999 = vst [vmem:[#allocation29_spill] sm:$0xff] %v2728_v57 }
 0x519   :  { %v1764_v3 = vpop.eup %1763 }
 0x51a   :  { %v1040_v22 = vmul.f32 %v1764_v3, %v1762_v20  ;;  %v2731_v20 = vld [vmem:[#allocation7] sm:$0xff]  ;;  %v3001_v3 = vmov 0.0  }
 0x51b   :  { %3000 = vst [vmem:[#allocation35_spill] sm:$0xff] %v2731_v20 }
 0x51c   :  { %1050 = vst [vmem:[#allocation9 + $0x20] sm:$0xff] %v1040_v22  ;;  %1124 = vmatmul.mubr.f32.vlgmr.msra.gmra.mxu0 %v1040_v22  ;;  %1195 = vmatmul.mubr.f32.vlgmr.msra.gmra.mxu1 %v1040_v22  ;;  %v2735_v22 = vld [vmem:[#allocation7 + $0x10] sm:$0xff] }
 0x51d   :  { %1248 = vmatpush1.msra.mxu0 %v2479_v0  ;;  %1319 = vmatpush1.msra.mxu1 %v2482_v1  ;;  %3002 = vst [vmem:[#allocation17_spill] sm:$0xff] %v2735_v22 }
 0x51e   :  { %1249 = vmatprep.subr.mxu0 %v2485_v48  ;;  %1320 = vmatprep.subr.mxu1 %v2488_v50 }
 0x51f   :  { %1250 = vmatpush1.msra.mxu0 %v2491_v46  ;;  %1321 = vmatpush1.msra.mxu1 %v2494_v59 }
 0x520   :  { %1251 = vmatprep.subr.mxu0 %v2497_v60  ;;  %1322 = vmatprep.subr.mxu1 %v2500_v52 }
 0x521   :  { %1252 = vmatpush1.msra.mxu0 %v2503_v9  ;;  %1323 = vmatpush1.msra.mxu1 %v2506_v56 }
 0x522   :  { %1253 = vmatprep.subr.mxu0 %v2509_v62  ;;  %1324 = vmatprep.subr.mxu1 %v2512_v2 }
 0x523   :  { %1254 = vmatpush1.msra.mxu0 %v2515_v4  ;;  %1325 = vmatpush1.msra.mxu1 %v2518_v6 }
 0x524   :  { %1255 = vmatprep.subr.mxu0 %v2521_v8  ;;  %1326 = vmatprep.subr.mxu1 %v2524_v11 }
 0x525   :  { %1256 = vmatpush1.msra.mxu0 %v2527_v13  ;;  %1327 = vmatpush1.msra.mxu1 %v2530_v15 }
 0x526   :  { %1257 = vmatprep.subr.mxu0 %v2533_v17  ;;  %1328 = vmatprep.subr.mxu1 %v2536_v23 }
 0x527   :  { %1258 = vmatpush1.msra.mxu0 %v2539_v24  ;;  %1329 = vmatpush1.msra.mxu1 %v2542_v25 }
 0x528   :  { %1259 = vmatprep.subr.mxu0 %v2545_v26  ;;  %1330 = vmatprep.subr.mxu1 %v2548_v27 }
 0x529   :  { %1260 = vmatpush1.msra.mxu0 %v2551_v28  ;;  %1331 = vmatpush1.msra.mxu1 %v2554_v29 }
 0x52a   :  { %1261 = vmatprep.subr.mxu0 %v2557_v30  ;;  %1332 = vmatprep.subr.mxu1 %v2560_v31 }
 0x52b   :  { %1262 = vmatpush1.msra.mxu0 %v2563_v32  ;;  %1333 = vmatpush1.msra.mxu1 %v2566_v33 }
 0x52c   :  { %1263 = vmatprep.subr.mxu0 %v2569_v34  ;;  %1334 = vmatprep.subr.mxu1 %v2572_v35 }
 0x52d   :  { %1264 = vmatpush1.msra.mxu0 %v2575_v36  ;;  %1335 = vmatpush1.msra.mxu1 %v2578_v37 }
 0x52e   :  { %1265 = vmatprep.subr.mxu0 %v2581_v38  ;;  %1336 = vmatprep.subr.mxu1 %v2584_v39 }
 0x52f   :  { %1266 = vmatpush1.msra.mxu0 %v2587_v40  ;;  %1337 = vmatpush1.msra.mxu1 %v2590_v41 }
 0x530   :  { %1267 = vmatprep.subr.mxu0 %v2593_v43  ;;  %1338 = vmatprep.subr.mxu1 %v2596_v45 }
 0x531   :  { %1268 = vmatpush1.msra.mxu0 %v2599_v47  ;;  %1339 = vmatpush1.msra.mxu1 %v2692_v44 }
 0x532   :  { %1269 = vmatprep.subr.mxu0 %v2603_v55  ;;  %1340 = vmatprep.subr.mxu1 %v2696_v63 }
 0x533   :  { %1270 = vmatpush1.msra.mxu0 %v2607_v42  ;;  %1341 = vmatpush1.msra.mxu1 %v2700_v49 }
 0x534   :  { %1271 = vmatprep.subr.mxu0 %v2611_v53  ;;  %1342 = vmatprep.subr.mxu1 %v2704_v51  ;;  %v1057_v51 = vld [vmem:[#allocation4 + $0xb0] sm:$0xff] }
 0x535   :  { %1272 = vmatpush1.msra.mxu0 %v2988_v5  ;;  %1343 = vmatpush1.msra.mxu1 %v2708_v10  ;;  %v1058_v10 = vld [vmem:[#allocation4 + $0xb8] sm:$0xff] }
 0x536   :  { %1273 = vmatprep.subr.mxu0 %v2990_v19  ;;  %1344 = vmatprep.subr.mxu1 %v2712_v58 }
 0x537   :  { %1274 = vmatpush1.msra.mxu0 %v2992_v21  ;;  %1345 = vmatpush1.msra.mxu1 %v2716_v12 }
 0x538   :  { %1275 = vmatprep.subr.mxu0 %v2994_v14  ;;  %1346 = vmatprep.subr.mxu1 %v2720_v16  ;;  %v1056_v14 = vld [vmem:[#allocation4 + $0xa8] sm:$0xff] }
 0x539   :  { %1276 = vmatpush1.msra.mxu0 %v2996_v61  ;;  %1347 = vmatpush1.msra.mxu1 %v2724_v54  ;;  %v3003_v61 = vld [vmem:[#allocation16_spill] sm:$0xff]  ;;  %v3004_v54 = vld [vmem:[#allocation22_spill] sm:$0xff] }
 0x53a   :  { %1277 = vmatprep.subr.mxu0 %v2998_v18  ;;  %1348 = vmatprep.subr.mxu1 %v2728_v57  ;;  %v1055_v18 = vld [vmem:[#allocation4 + $0xa0] sm:$0xff] }
 0x53b   :  { %1278 = vmatpush1.msra.mxu0 %v2731_v20  ;;  %1311 = vmatprep.mubr.f32.mxu0 %v3001_v3 }
 0x53c   :  { %1349 = vmatpush1.msra.mxu1 %v2735_v22  ;;  %1382 = vmatprep.mubr.f32.mxu1 %v3001_v3 }
 0x53d   :  { %1435 = vmatprep.subr.mxu0 %v3003_v61  ;;  %1506 = vmatprep.subr.mxu1 %v3004_v54 }
 0x5dc   :  { %v1125_v16 = vpop.f32.mrf.mxu0  ;;  %v1196_v20 = vpop.f32.mrf.mxu1 }
 0x5dd   :  { %v1201_v57 = vadd.f32 %v1125_v16, %v1055_v18  ;;  %v1203_v61 = vadd.f32 %v1196_v20, %v1057_v51 }
 0x5de   :  { %v1127_v12 = vpop.f32.mrf.mxu0  ;;  %v1198_v5 = vpop.f32.mrf.mxu1 }
 0x5df   :  { %v1667_v21 = vmul.f32 -1.442695, %v1201_v57  ;;  %v1202_v58 = vadd.f32 %v1127_v12, %v1056_v14  ;;  %v1204_v22 = vadd.f32 %v1198_v5, %v1058_v10 }
 0x5e1   :  { %1765 = vpow2.f32 %v1667_v21  ;;  %v1668_v19 = vmul.f32 -1.442695, %v1202_v58  ;;  %v1669_v3 = vmul.f32 -1.442695, %v1204_v22 }
 0x5e3   :  { %1767 = vpow2.f32 %v1668_v19 }
 0x5e4   :  { %1769 = vpow2.f32 %v1669_v3  ;;  %v1431_v3 = vld [vmem:[#allocation4 + $0xe0] sm:$0xff] }
 0x5ee   :  { %v1766_v53 = vpop.eup %1765 }
 0x5ef   :  { %v1208_v49 = vadd.f32 1.0, %v1766_v53 }
 0x5f0   :  { %v1768_v54 = vpop.eup %1767 }
 0x5f1   :  { %1771 = vrcp.f32 %v1208_v49  ;;  %v1214_v42 = vadd.f32 1.0, %v1768_v54  ;;  %v1770_v16 = vpop.eup %1769 }
 0x5f2   :  { %1773 = vtanh.f32 %v1203_v61  ;;  %v1221_v58 = vadd.f32 1.0, %v1770_v16  ;;  %v1432_v61 = vld [vmem:[#allocation4 + $0xe8] sm:$0xff] }
 0x5f3   :  { %1775 = vrcp.f32 %v1214_v42 }
 0x5f4   :  { %1777 = vrcp.f32 %v1221_v58 }
 0x5fe   :  { %v1772_v12 = vpop.eup %1771 }
 0x5ff   :  { %v1774_v21 = vpop.eup %1773 }
 0x600   :  { %v1776_v14 = vpop.eup %1775  ;;  %v1225_v19 = vmul.f32 %v1774_v21, %v1772_v12 }
 0x601   :  { %v1224_v18 = vmul.f32 %v1776_v14, %v2648_v7  ;;  %v1778_v53 = vpop.eup %1777 }
 0x603   :  { %v2742_v5 = vadd.f32 %v1225_v19, %v1224_v18  ;;  %v1434_v19 = vld [vmem:[#allocation4 + $0xf8] sm:$0xff] }
 0x605   :  { %1779 = vtanh.f32 %v2742_v5 }
 0x612   :  { %v1780_v51 = vpop.eup %1779 }
 0x613   :  { %v1228_v10 = vmul.f32 %v1780_v51, %v1778_v53  ;;  %v1433_v53 = vld [vmem:[#allocation4 + $0xf0] sm:$0xff] }
 0x615   :  { %1238 = vst [vmem:[#allocation9 + $0x28] sm:$0xff] %v1228_v10  ;;  %1312 = vmatmul.mubr.f32.vlgmr.msra.gmra.mxu0 %v1228_v10  ;;  %1383 = vmatmul.mubr.f32.vlgmr.msra.gmra.mxu1 %v1228_v10 }
 0x616   :  { %1436 = vmatpush1.msra.mxu0 %v2479_v0  ;;  %1507 = vmatpush1.msra.mxu1 %v2482_v1  ;;  %v3005_v0 = vld [vmem:[#allocation18_spill] sm:$0xff]  ;;  %v3006_v1 = vld [vmem:[#allocation31_spill] sm:$0xff] }
 0x617   :  { %1437 = vmatprep.subr.mxu0 %v2485_v48  ;;  %1508 = vmatprep.subr.mxu1 %v2488_v50  ;;  %v3007_v48 = vld [vmem:[#allocation24_spill] sm:$0xff]  ;;  %v3008_v50 = vld [vmem:[#allocation23_spill] sm:$0xff] }
 0x618   :  { %1438 = vmatpush1.msra.mxu0 %v2491_v46  ;;  %1509 = vmatpush1.msra.mxu1 %v2494_v59  ;;  %v3009_v46 = vld [vmem:[#allocation19_spill] sm:$0xff]  ;;  %v3010_v59 = vld [vmem:[#allocation32_spill] sm:$0xff] }
 0x619   :  { %1439 = vmatprep.subr.mxu0 %v2497_v60  ;;  %1510 = vmatprep.subr.mxu1 %v2500_v52  ;;  %v3011_v60 = vld [vmem:[#allocation26_spill] sm:$0xff]  ;;  %v3012_v52 = vld [vmem:[#allocation25_spill] sm:$0xff] }
 0x61a   :  { %1440 = vmatpush1.msra.mxu0 %v2503_v9  ;;  %1511 = vmatpush1.msra.mxu1 %v2506_v56  ;;  %v3013_v9 = vld [vmem:[#allocation20_spill] sm:$0xff]  ;;  %v3014_v56 = vld [vmem:[#allocation33_spill] sm:$0xff] }
 0x61b   :  { %1441 = vmatprep.subr.mxu0 %v2509_v62  ;;  %1512 = vmatprep.subr.mxu1 %v2512_v2  ;;  %v3015_v62 = vld [vmem:[#allocation28_spill] sm:$0xff]  ;;  %v3016_v2 = vld [vmem:[#allocation27_spill] sm:$0xff] }
 0x61c   :  { %1442 = vmatpush1.msra.mxu0 %v2515_v4  ;;  %1513 = vmatpush1.msra.mxu1 %v2518_v6  ;;  %v3017_v4 = vld [vmem:[#allocation21_spill] sm:$0xff]  ;;  %v3018_v6 = vld [vmem:[#allocation34_spill] sm:$0xff] }
 0x61d   :  { %1443 = vmatprep.subr.mxu0 %v2521_v8  ;;  %1514 = vmatprep.subr.mxu1 %v2524_v11  ;;  %v3019_v8 = vld [vmem:[#allocation30_spill] sm:$0xff]  ;;  %v3020_v11 = vld [vmem:[#allocation29_spill] sm:$0xff] }
 0x61e   :  { %1444 = vmatpush1.msra.mxu0 %v2527_v13  ;;  %1515 = vmatpush1.msra.mxu1 %v2530_v15  ;;  %v3021_v13 = vld [vmem:[#allocation35_spill] sm:$0xff]  ;;  %v3022_v15 = vmov 0.0  }
 0x61f   :  { %1445 = vmatprep.subr.mxu0 %v2533_v17  ;;  %1516 = vmatprep.subr.mxu1 %v2536_v23  ;;  %v3023_v17 = vld [vmem:[#allocation17_spill] sm:$0xff]  ;;  %v1243_v23 = vld [vmem:[#allocation4 + $0xc0] sm:$0xff] }
 0x620   :  { %1446 = vmatpush1.msra.mxu0 %v2539_v24  ;;  %1517 = vmatpush1.msra.mxu1 %v2542_v25  ;;  %v1244_v25 = vld [vmem:[#allocation4 + $0xc8] sm:$0xff] }
 0x621   :  { %1447 = vmatprep.subr.mxu0 %v2545_v26  ;;  %1518 = vmatprep.subr.mxu1 %v2548_v27 }
 0x622   :  { %1448 = vmatpush1.msra.mxu0 %v2551_v28  ;;  %1519 = vmatpush1.msra.mxu1 %v2554_v29 }
 0x623   :  { %1449 = vmatprep.subr.mxu0 %v2557_v30  ;;  %1520 = vmatprep.subr.mxu1 %v2560_v31 }
 0x624   :  { %1450 = vmatpush1.msra.mxu0 %v2563_v32  ;;  %1521 = vmatpush1.msra.mxu1 %v2566_v33  ;;  %v1246_v32 = vld [vmem:[#allocation4 + $0xd8] sm:$0xff] }
 0x625   :  { %1451 = vmatprep.subr.mxu0 %v2569_v34  ;;  %1522 = vmatprep.subr.mxu1 %v2572_v35  ;;  %v1245_v35 = vld [vmem:[#allocation4 + $0xd0] sm:$0xff] }
 0x626   :  { %1452 = vmatpush1.msra.mxu0 %v2575_v36  ;;  %1523 = vmatpush1.msra.mxu1 %v2578_v37 }
 0x627   :  { %1453 = vmatprep.subr.mxu0 %v2581_v38  ;;  %1524 = vmatprep.subr.mxu1 %v2584_v39 }
 0x628   :  { %1454 = vmatpush1.msra.mxu0 %v2587_v40  ;;  %1525 = vmatpush1.msra.mxu1 %v2590_v41 }
 0x629   :  { %1455 = vmatprep.subr.mxu0 %v2593_v43  ;;  %1526 = vmatprep.subr.mxu1 %v2596_v45 }
 0x62a   :  { %1456 = vmatpush1.msra.mxu0 %v2599_v47  ;;  %1527 = vmatpush1.msra.mxu1 %v2692_v44 }
 0x62b   :  { %1457 = vmatprep.subr.mxu0 %v2603_v55  ;;  %1528 = vmatprep.subr.mxu1 %v2696_v63 }
 0x62c   :  { %1458 = vmatpush1.msra.mxu0 %v3005_v0  ;;  %1529 = vmatpush1.msra.mxu1 %v3006_v1 }
 0x62d   :  { %1459 = vmatprep.subr.mxu0 %v3007_v48  ;;  %1530 = vmatprep.subr.mxu1 %v3008_v50 }
 0x62e   :  { %1460 = vmatpush1.msra.mxu0 %v3009_v46  ;;  %1531 = vmatpush1.msra.mxu1 %v3010_v59 }
 0x62f   :  { %1461 = vmatprep.subr.mxu0 %v3011_v60  ;;  %1532 = vmatprep.subr.mxu1 %v3012_v52 }
 0x630   :  { %1462 = vmatpush1.msra.mxu0 %v3013_v9  ;;  %1533 = vmatpush1.msra.mxu1 %v3014_v56 }
 0x631   :  { %1463 = vmatprep.subr.mxu0 %v3015_v62  ;;  %1534 = vmatprep.subr.mxu1 %v3016_v2 }
 0x632   :  { %1464 = vmatpush1.msra.mxu0 %v3017_v4  ;;  %1535 = vmatpush1.msra.mxu1 %v3018_v6 }
 0x633   :  { %1465 = vmatprep.subr.mxu0 %v3019_v8  ;;  %1536 = vmatprep.subr.mxu1 %v3020_v11 }
 0x634   :  { %1466 = vmatpush1.msra.mxu0 %v3021_v13  ;;  %1499 = vmatprep.mubr.f32.mxu0 %v3022_v15 }
 0x635   :  { %1537 = vmatpush1.msra.mxu1 %v3023_v17  ;;  %1570 = vmatprep.mubr.f32.mxu1 %v3022_v15 }
 0x6d5   :  { %v1313_v24 = vpop.f32.mrf.mxu0  ;;  %v1384_v30 = vpop.f32.mrf.mxu1 }
 0x6d6   :  { %v1389_v26 = vadd.f32 %v1313_v24, %v1243_v23  ;;  %v1391_v38 = vadd.f32 %v1384_v30, %v1245_v35 }
 0x6d7   :  { %v1315_v27 = vpop.f32.mrf.mxu0  ;;  %v1386_v33 = vpop.f32.mrf.mxu1 }
 0x6d8   :  { %v1670_v28 = vmul.f32 -1.442695, %v1389_v26  ;;  %v1390_v29 = vadd.f32 %v1315_v27, %v1244_v25  ;;  %v1392_v34 = vadd.f32 %v1386_v33, %v1246_v32 }
 0x6da   :  { %1781 = vpow2.f32 %v1670_v28  ;;  %v1671_v31 = vmul.f32 -1.442695, %v1390_v29  ;;  %v1672_v36 = vmul.f32 -1.442695, %v1392_v34 }
 0x6dc   :  { %1783 = vpow2.f32 %v1671_v31 }
 0x6dd   :  { %1785 = vpow2.f32 %v1672_v36 }
 0x6e7   :  { %v1782_v37 = vpop.eup %1781 }
 0x6e8   :  { %v1396_v39 = vadd.f32 1.0, %v1782_v37 }
 0x6e9   :  { %v1784_v40 = vpop.eup %1783 }
 0x6ea   :  { %1787 = vrcp.f32 %v1396_v39  ;;  %v1402_v41 = vadd.f32 1.0, %v1784_v40  ;;  %v1786_v43 = vpop.eup %1785 }
 0x6eb   :  { %1789 = vtanh.f32 %v1391_v38  ;;  %v1409_v42 = vadd.f32 1.0, %v1786_v43 }
 0x6ec   :  { %1791 = vrcp.f32 %v1402_v41 }
 0x6ed   :  { %1793 = vrcp.f32 %v1409_v42 }
 0x6f7   :  { %v1788_v45 = vpop.eup %1787 }
 0x6f8   :  { %v1790_v47 = vpop.eup %1789 }
 0x6f9   :  { %v1792_v55 = vpop.eup %1791  ;;  %v1413_v7 = vmul.f32 %v1790_v47, %v1788_v45 }
 0x6fa   :  { %v1412_v44 = vmul.f32 %v1792_v55, %v2742_v5  ;;  %v1794_v49 = vpop.eup %1793 }
 0x6fc   :  { %v1414_v63 = vadd.f32 %v1413_v7, %v1412_v44 }
 0x6fe   :  { %1795 = vtanh.f32 %v1414_v63 }
 0x70b   :  { %v1796_v57 = vpop.eup %1795 }
 0x70c   :  { %v1416_v20 = vmul.f32 %v1796_v57, %v1794_v49 }
 0x70e   :  { %1426 = vst [vmem:[#allocation9 + $0x30] sm:$0xff] %v1416_v20  ;;  %1500 = vmatmul.mubr.f32.vlgmr.msra.gmra.mxu0 %v1416_v20  ;;  %1571 = vmatmul.mubr.f32.vlgmr.msra.gmra.mxu1 %v1416_v20 }
 0x7ce   :  { %v1501_v22 = vpop.f32.mrf.mxu0  ;;  %v1572_v14 = vpop.f32.mrf.mxu1 }
 0x7cf   :  { %v1577_v54 = vadd.f32 %v1501_v22, %v1431_v3  ;;  %v1579_v0 = vadd.f32 %v1572_v14, %v1433_v53 }
 0x7d0   :  { %v1503_v16 = vpop.f32.mrf.mxu0  ;;  %v1574_v18 = vpop.f32.mrf.mxu1 }
 0x7d1   :  { %v1673_v12 = vmul.f32 -1.442695, %v1577_v54  ;;  %v1578_v21 = vadd.f32 %v1503_v16, %v1432_v61  ;;  %v1580_v5 = vadd.f32 %v1574_v18, %v1434_v19 }
 0x7d3   :  { %1797 = vpow2.f32 %v1673_v12  ;;  %v1674_v58 = vmul.f32 -1.442695, %v1578_v21  ;;  %v1675_v51 = vmul.f32 -1.442695, %v1580_v5 }
 0x7d5   :  { %1799 = vpow2.f32 %v1674_v58 }
 0x7d6   :  { %1801 = vpow2.f32 %v1675_v51 }
 0x7e0   :  { %v1798_v10 = vpop.eup %1797 }
 0x7e1   :  { %v1584_v1 = vadd.f32 1.0, %v1798_v10 }
 0x7e2   :  { %v1800_v48 = vpop.eup %1799 }
 0x7e3   :  { %1803 = vrcp.f32 %v1584_v1  ;;  %v1590_v50 = vadd.f32 1.0, %v1800_v48  ;;  %v1802_v46 = vpop.eup %1801 }
 0x7e4   :  { %1805 = vtanh.f32 %v1579_v0  ;;  %v1597_v9 = vadd.f32 1.0, %v1802_v46 }
 0x7e5   :  { %1807 = vrcp.f32 %v1590_v50 }
 0x7e6   :  { %1809 = vrcp.f32 %v1597_v9 }
 0x7f0   :  { %v1804_v59 = vpop.eup %1803 }
 0x7f1   :  { %v1806_v60 = vpop.eup %1805 }
 0x7f2   :  { %v1808_v52 = vpop.eup %1807  ;;  %v1601_v56 = vmul.f32 %v1806_v60, %v1804_v59 }
 0x7f3   :  { %v1600_v62 = vmul.f32 %v1808_v52, %v1414_v63 }
 0x7f5   :  { %v1602_v2 = vadd.f32 %v1601_v56, %v1600_v62 }
 0x7f7   :  { %1811 = vtanh.f32 %v1602_v2  ;;  %1619 = vst [vmem:[#allocation10] sm:$0xff] %v1602_v2 }
 0x7f8   :  { %1928 = shalt.err (!%p1925_p0)
}
 0x7f9   :  { %1641 = dma.vmem_to_hbm [thread:$0]  %s1639_s1, 128, %s2819_s3, [#allocation11]   ;;  %v1810_v4 = vpop.eup %1809 }
 0x7fa   :  { %s1971_s27 = smov [#allocation9]  }
 0x7fb   :  { %s1625_s28 = sshll.u32 %s1971_s27, 4  ;;  %s1626_s28 = int_to_ptr.vmem [resolvable:$true] %s1625_s28 }
 0x7fc   :  { %s1937_s29 = scalar_lea.vmem %s1626_s28, 1024  ;;  %p1942_p2 = scmp.lt.s32.totalorder %s1626_s28, %s1626_s28 }
 0x7fd   :  { %p1938_p1 = scmp.ne.s32.totalorder %s1626_s28, %s1937_s29  ;;  %p1943_p3 = scmp.lt.s32.totalorder %s1937_s29, %s1937_s29 }
 0x7ff   :  { %p1944_p4 = por %p1943_p3, %p1942_p2 }
 0x801   :  { %p1945_p5 = pnand %p1944_p4, %p1938_p1 }
 0x804   :  { %v1812_v6 = vpop.eup %1811 }
 0x805   :  { %v1604_v8 = vmul.f32 %v1812_v6, %v1810_v4 }
 0x807   :  { %1614 = vst [vmem:[#allocation9 + $0x38] sm:$0xff] %v1604_v8 }
 0x808   :  { %1948 = shalt.err (!%p1945_p5)
}
 0x809   :  { %s1972_s30 = smov 128   ;;  %s1973_s4 = smov 8  }
 0x80a   :  { %1631 = dma.vmem_to_hbm [thread:$0]  %s1626_s28, 1024, %s2818_s2, [#allocation6], %s1972_s30, %s1972_s30, %s1973_s4  }
 0x80b   :  { %1961 = dma.done.wait [#allocation6], 1024  }
 0x80c   :  { %1962 = vsyncadd [#allocation6], 4294966272 }
 0x80d   :  { %1963 = dma.done.wait [#allocation11], 128  }
 0x80e   :  { %1964 = vsyncadd [#allocation11], 4294967168 }
 0x80f   :  { %1648 = vsyncpa [#allocation5], 1 }
 0x810   :  { %1649 = vsyncpa [#allocation8], 1 }
 0x811   :  { %1650 = vsyncpa [#allocation6], 1 }
 0x812   :  { %1651 = vsyncpa [#allocation11], 1 }

</bundles_post_ra>
